<compile_context>
chip_gen: v5e
topology: v5e:2x2
jax: 0.10.0
libtpu: 0.0.40
codegen_flags: <defaults>
</compile_context>

<pallas_src>
import functools
import math

import jax
import jax.numpy as jnp
from jax.experimental import pallas as pl
from jax.experimental.pallas import tpu as pltpu

# MXU operand dtype (f32 accumulation everywhere).  bf16 ~2x MXU throughput
# and ~2x less weight DMA on v5e/v6e/v7x; use jnp.float32 for exact parity.
MATMUL_DTYPE = jnp.bfloat16


# ------------------------------ tile helpers ------------------------------- #

def _row_tile(m, target=512):
    # sublane axis: full dim or a multiple of 8
    return m if m <= target else target


def _lane_tile(o, target=1024):
    # lane axis: full dim or a multiple of 128
    return o if o <= target else target


def _k_tile(k, target=1024):
    # Reduction axis must divide K exactly (accumulator correctness) and be a
    # multiple of 128 (x-block lane dim) unless it equals K.
    if k <= target:
        return k
    for t in range(target, 0, -128):
        if k % t == 0:
            return t
    # TODO(synk): K with no multiple-of-128 divisor <= target falls back to a
    # full-K block (large VMEM); not hit by GPT-2 shapes (64/768/3072/E).
    return k


def _vmem_limit_bytes(raw_bytes):
    # headroom for Mosaic internal scratch; floor covers v5e's 16 MiB default,
    # cap stays well under v7x's 64 MiB physical VMEM.
    limit = int(raw_bytes * 1.3) + (2 << 20)
    return int(min(max(limit, 16 << 20), 48 << 20))


# ------------------------------- linear ------------------------------------ #

def _linear_kernel(*refs, nk, activation, has_bias):
    if has_bias:
        x_ref, w_ref, b_ref, o_ref, acc_ref = refs
    else:
        x_ref, w_ref, o_ref, acc_ref = refs
        b_ref = None
    k = pl.program_id(2)

    @pl.when(k == 0)
    def _():
        acc_ref[...] = jnp.zeros_like(acc_ref)

    x = x_ref[...]
    w = w_ref[...]
    if x.dtype != MATMUL_DTYPE:
        x = x.astype(MATMUL_DTYPE)
    if w.dtype != MATMUL_DTYPE:
        w = w.astype(MATMUL_DTYPE)
    acc_ref[...] += jnp.dot(x, w, preferred_element_type=jnp.float32)

    @pl.when(k == nk - 1)
    def _():
        y = acc_ref[...]
        if has_bias:
            y = y + b_ref[...].astype(jnp.float32)
        if activation == "relu":
            y = jnp.maximum(y, 0.0)
        o_ref[...] = y.astype(o_ref.dtype)


def linear(x, w_t, b=None, activation=None):
    """y = x @ w_t (+ b); w_t is pre-transposed (in_features, out_features).
    Optional fused ReLU.  f32 accumulator over the K grid axis."""
    M, K = x.shape
    K2, O = w_t.shape
    assert K == K2
    tm = _row_tile(M)
    to = _lane_tile(O)
    tk = _k_tile(K)
    nk = K // tk
    grid = (pl.cdiv(M, tm), pl.cdiv(O, to), nk)
    has_bias = b is not None

    in_specs = [
        pl.BlockSpec((tm, tk), lambda i, j, k: (i, k)),
        pl.BlockSpec((tk, to), lambda i, j, k: (k, j)),
    ]
    args = [x, w_t]
    if has_bias:
        in_specs.append(pl.BlockSpec((1, to), lambda i, j, k: (0, j)))
        args.append(b.reshape(1, O))

    xb = x.dtype.itemsize
    wb = w_t.dtype.itemsize
    raw = (2 * tm * tk * xb + 2 * tk * to * wb + 2 * to * 4
           + 2 * tm * to * xb + tm * to * 4)
    cost = pl.CostEstimate(
        flops=2 * M * K * O,
        transcendentals=0,
        bytes_accessed=M * K * xb + K * O * wb + M * O * xb)

    return pl.pallas_call(
        functools.partial(_linear_kernel, nk=nk, activation=activation,
                          has_bias=has_bias),
        out_shape=jax.ShapeDtypeStruct((M, O), x.dtype),
        grid=grid,
        in_specs=in_specs,
        out_specs=pl.BlockSpec((tm, to), lambda i, j, k: (i, j)),
        scratch_shapes=[pltpu.VMEM((tm, to), jnp.float32)],
        compiler_params=pltpu.CompilerParams(
            dimension_semantics=("parallel", "parallel", "arbitrary"),
            vmem_limit_bytes=_vmem_limit_bytes(raw)),
        cost_estimate=cost,
    )(*args)


# -------------------- linear + bias + residual + layernorm ------------------ #

def _linear_res_ln_kernel(x_ref, w_ref, b_ref, r_ref, g_ref, beta_ref, o_ref,
                          acc_ref, *, nk, eps):
    k = pl.program_id(1)

    @pl.when(k == 0)
    def _():
        acc_ref[...] = jnp.zeros_like(acc_ref)

    x = x_ref[...]
    w = w_ref[...]
    if x.dtype != MATMUL_DTYPE:
        x = x.astype(MATMUL_DTYPE)
    if w.dtype != MATMUL_DTYPE:
        w = w.astype(MATMUL_DTYPE)
    acc_ref[...] += jnp.dot(x, w, preferred_element_type=jnp.float32)

    @pl.when(k == nk - 1)
    def _():
        y = (acc_ref[...] + b_ref[...].astype(jnp.float32)
             + r_ref[...].astype(jnp.float32))
        mean = jnp.mean(y, axis=-1, keepdims=True)
        var = jnp.mean((y - mean) ** 2, axis=-1, keepdims=True)   # biased (torch)
        yn = (y - mean) * jax.lax.rsqrt(var + eps)
        o_ref[...] = (yn * g_ref[...].astype(jnp.float32)
                      + beta_ref[...].astype(jnp.float32)).astype(o_ref.dtype)


def linear_residual_layernorm(x, w_t, b, r, gamma, beta, eps=1e-5):
    """LayerNorm(x @ w_t + b + r): full-E lane block so the LN epilogue sees a
    whole row; removes a separate residual+LN kernel and its HBM traffic."""
    M, K = x.shape
    K2, E = w_t.shape
    assert K == K2 and r.shape == (M, E)
    tm = _row_tile(M)
    tk = _k_tile(K)
    nk = K // tk
    grid = (pl.cdiv(M, tm), nk)

    xb = x.dtype.itemsize
    wb = w_t.dtype.itemsize
    raw = (2 * tm * tk * xb + 2 * tk * E * wb + 2 * E * 4 * 3
           + 2 * tm * E * 4 + 2 * tm * E * xb + tm * E * 4)
    cost = pl.CostEstimate(
        flops=2 * M * K * E + 8 * M * E,
        transcendentals=0,
        bytes_accessed=M * K * xb + K * E * wb + 2 * M * E * 4 + M * E * xb)

    return pl.pallas_call(
        functools.partial(_linear_res_ln_kernel, nk=nk, eps=eps),
        out_shape=jax.ShapeDtypeStruct((M, E), x.dtype),
        grid=grid,
        in_specs=[
            pl.BlockSpec((tm, tk), lambda i, k: (i, k)),
            pl.BlockSpec((tk, E), lambda i, k: (k, 0)),
            pl.BlockSpec((1, E), lambda i, k: (0, 0)),
            pl.BlockSpec((tm, E), lambda i, k: (i, 0)),
            pl.BlockSpec((1, E), lambda i, k: (0, 0)),
            pl.BlockSpec((1, E), lambda i, k: (0, 0)),
        ],
        out_specs=pl.BlockSpec((tm, E), lambda i, k: (i, 0)),
        scratch_shapes=[pltpu.VMEM((tm, E), jnp.float32)],
        compiler_params=pltpu.CompilerParams(
            dimension_semantics=("parallel", "arbitrary"),
            vmem_limit_bytes=_vmem_limit_bytes(raw)),
        cost_estimate=cost,
    )(x, w_t, b.reshape(1, E), r, gamma.reshape(1, E), beta.reshape(1, E))


# ------------------------------- attention ---------------------------------- #

def _heads_per_block(head_dim, heads):
    # Smallest head group whose lane width (g * head_dim) is a multiple of 128
    # -> lane-dense blocks; otherwise use all heads (full E block).
    for g in range(1, heads + 1):
        if heads % g == 0 and (g * head_dim) % 128 == 0:
            return g
    return heads


def _attention_kernel(q_ref, k_ref, v_ref, o_ref, *, scale, heads_per_block,
                      head_dim):
    L = q_ref.shape[1]
    # Scale q once per block (cheaper than scaling the (L, L) score matrix);
    # masked entries end up at -1e20 either way -> exp() == 0.
    qv = (q_ref[0].astype(jnp.float32) * scale).astype(MATMUL_DTYPE)
    kv = k_ref[0].astype(MATMUL_DTYPE)
    vv = v_ref[0].astype(MATMUL_DTYPE)
    # Causal mask generated in-kernel (VPU iota + compare, no mask DMA).
    row = jax.lax.broadcasted_iota(jnp.int32, (L, L), 0)
    col = jax.lax.broadcasted_iota(jnp.int32, (L, L), 1)
    causal = row >= col
    neg = jnp.float32(-1e20)

    for g in range(heads_per_block):          # static unrolled loop over heads
        lo = g * head_dim
        q = qv[:, lo:lo + head_dim]
        k = kv[:, lo:lo + head_dim]
        v = vv[:, lo:lo + head_dim]
        # q @ k.T via dot_general (contract dim 1 of both), f32 accumulation.
        s = jax.lax.dot_general(q, k, (((1,), (1,)), ((), ())),
                                preferred_element_type=jnp.float32)   # (L, L)
        s = jnp.where(causal, s, neg)
        m = jnp.max(s, axis=-1, keepdims=True)
        p = jnp.exp(s - m)
        p = p / jnp.sum(p, axis=-1, keepdims=True)         # exact softmax
        out = jnp.dot(p.astype(MATMUL_DTYPE), v,
                      preferred_element_type=jnp.float32)  # (L, D)
        # Write each head directly into its lane slice (no concatenate).
        o_ref[0, :, lo:lo + head_dim] = out.astype(o_ref.dtype)


def attention(q, k, v, heads, embed_size):
    """q, k, v: (N, L, E) with head h occupying lanes [h*D, (h+1)*D)."""
    N, L, E = q.shape
    D = E // heads
    G = _heads_per_block(D, heads)
    scale = 1.0 / math.sqrt(float(embed_size))   # reference scales by sqrt(E)
    spec = pl.BlockSpec((1, L, G * D), lambda n, g: (n, 0, g))
    # TODO(synk): flash-style KV tiling (online softmax m/l/acc scratch) is
    # needed before L ~1024 on v7x (the (L,L) f32 score block + operands exceed
    # its 32 MiB scoped / 64 MiB physical VMEM); fine at these shapes.
    return pl.pallas_call(
        functools.partial(_attention_kernel, scale=scale,
                          heads_per_block=G, head_dim=D),
        out_shape=jax.ShapeDtypeStruct((N, L, E), q.dtype),
        grid=(N, heads // G),
        in_specs=[spec, spec, spec],
        out_specs=spec,
        compiler_params=pltpu.CompilerParams(
            dimension_semantics=("parallel", "parallel")),
    )(q, k, v)


# ------------------------------- model glue --------------------------------- #

def gpt2_layer_forward(x, p, heads):
    N, L, E = x.shape
    D = E // heads
    x2d = x.reshape(N * L, E)
    # Fused per-head Q/K/V projections: one (N*L*H, D) @ (D, 3D_pad) linear
    # (lane-padded weight -> dense stores), then cheap lane slices.
    xh = x.reshape(N * L * heads, D)
    qkv = linear(xh, p["wqkv_t"])                                    # (N*L*H, 3D_pad)
    q = qkv[:, 0 * D:1 * D].reshape(N, L, E)
    k = qkv[:, 1 * D:2 * D].reshape(N, L, E)
    v = qkv[:, 2 * D:3 * D].reshape(N, L, E)
    attn = attention(q, k, v, heads, E)                              # (N, L, E)
    # fc_out + residual + LayerNorm1 fused into one kernel epilogue.
    x1 = linear_residual_layernorm(attn.reshape(N * L, E), p["w_out_t"],
                                   p["b_out"], x2d, p["ln1_g"], p["ln1_b"])
    # dropout: eval-mode identity
    h = linear(x1, p["w1_t"], p["b1"], activation="relu")
    # fc2 + residual + LayerNorm2 fused.
    x2 = linear_residual_layernorm(h, p["w2_t"], p["b2"], x1,
                                   p["ln2_g"], p["ln2_b"])
    return x2.reshape(N, L, E)


def gpt2_forward(tokens, params, heads):
    # TODO(synk): embedding gather stays in plain JAX (data-dependent gather).
    x = jnp.take(params["embedding"], tokens, axis=0)                # (N, L, E)
    for lp in params["layers"]:
        x = gpt2_layer_forward(x, lp, heads)
    N, L, E = x.shape
    logits = linear(x.reshape(N * L, E), params["w_fc_t"], params["b_fc"])
    return logits.reshape(N, L, -1)


def init_params(key, vocab_size, embed_size, heads, ff_hidden_dim, num_layers):
    D = embed_size // heads
    wd = MATMUL_DTYPE
    keys = jax.random.split(key, 2 + num_layers)
    params = {
        "embedding": 0.02 * jax.random.normal(keys[0], (vocab_size, embed_size), jnp.float32),
        # Weights stored pre-transposed (in_features, out_features) and in the
        # matmul operand dtype (halves weight DMA when bf16).
        "w_fc_t": (0.02 * jax.random.normal(keys[1], (embed_size, vocab_size), jnp.float32)).astype(wd),
        "b_fc": jnp.zeros((vocab_size,), jnp.float32),
        "layers": [],
    }
    for l in range(num_layers):
        lk = jax.random.split(keys[2 + l], 6)
        wq_t = 0.02 * jax.random.normal(lk[0], (D, D), jnp.float32)
        wk_t = 0.02 * jax.random.normal(lk[1], (D, D), jnp.float32)
        wv_t = 0.02 * jax.random.normal(lk[2], (D, D), jnp.float32)
        # Fused QKV weight, lane-padded to a multiple of 128 so the output
        # store slab is lane-dense (padded columns are zero and sliced away).
        wqkv_t = jnp.concatenate([wq_t, wk_t, wv_t], axis=1)        # (D, 3D)
        pad = (-(3 * D)) % 128
        if pad:
            wqkv_t = jnp.pad(wqkv_t, ((0, 0), (0, pad)))
        params["layers"].append({
            "wqkv_t": wqkv_t.astype(wd),
            "w_out_t": (0.02 * jax.random.normal(lk[3], (embed_size, embed_size), jnp.float32)).astype(wd),
            "b_out": jnp.zeros((embed_size,), jnp.float32),
            "ln1_g": jnp.ones((embed_size,), jnp.float32),
            "ln1_b": jnp.zeros((embed_size,), jnp.float32),
            "w1_t": (0.02 * jax.random.normal(lk[4], (embed_size, ff_hidden_dim), jnp.float32)).astype(wd),
            "b1": jnp.zeros((ff_hidden_dim,), jnp.float32),
            "w2_t": (0.02 * jax.random.normal(lk[5], (ff_hidden_dim, embed_size), jnp.float32)).astype(wd),
            "b2": jnp.zeros((embed_size,), jnp.float32),
            "ln2_g": jnp.ones((embed_size,), jnp.float32),
            "ln2_b": jnp.zeros((embed_size,), jnp.float32),
        })
    return params


if __name__ == "__main__":
    # Small, module-consistent shapes.
    vocab_size = 50
    embed_size = 32
    heads = 4
    num_layers = 2
    ff_hidden_dim = 64
    batch, seq = 2, 8

    key = jax.random.PRNGKey(0)
    pkey, tkey = jax.random.split(key)
    params = init_params(pkey, vocab_size, embed_size, heads, ff_hidden_dim,
                         num_layers)
    tokens = jax.random.randint(tkey, (batch, seq), 0, vocab_size, dtype=jnp.int32)

    fwd = jax.jit(functools.partial(gpt2_forward, heads=heads))
    logits = fwd(tokens, params)
    jax.block_until_ready(logits)
    assert logits.shape == (batch, seq, vocab_size)
    print("KERNEL_OK")
</pallas_src>

<mosaic_0001>
module attributes {stable_mosaic.version = 11 : i64} {
  func.func @_attention_kernel(%arg0: i32, %arg1: i32, %arg2: memref<1x8x32xf32, #tpu.memory_space<vmem>>, %arg3: memref<1x8x32xf32, #tpu.memory_space<vmem>>, %arg4: memref<1x8x32xf32, #tpu.memory_space<vmem>>, %arg5: memref<1x8x32xf32, #tpu.memory_space<vmem>>) attributes {dimension_semantics = [#tpu.dimension_semantics<parallel>, #tpu.dimension_semantics<parallel>], iteration_bounds = array<i64: 2, 1>, scalar_prefetch = 0 : i64, scratch_operands = 0 : i64, tpu.core_type = #tpu.core_type<tc>, window_params = [{transform_indices = @transform_0, window_bounds = array<i64: 1, 8, 32>}, {transform_indices = @transform_1, window_bounds = array<i64: 1, 8, 32>}, {transform_indices = @transform_2, window_bounds = array<i64: 1, 8, 32>}, {transform_indices = @transform_3, window_bounds = array<i64: 1, 8, 32>}]} {
    %c0 = arith.constant 0 : index
    %c0_0 = arith.constant 0 : index
    %c0_1 = arith.constant 0 : index
    %0 = vector.load %arg2[%c0, %c0_0, %c0_1] : memref<1x8x32xf32, #tpu.memory_space<vmem>>, vector<1x8x32xf32>
    %1 = vector.shape_cast %0 : vector<1x8x32xf32> to vector<8x32xf32>
    %cst = arith.constant 0.176776692 : f32
    %2 = vector.broadcast %cst : f32 to vector<8x32xf32>
    %3 = arith.mulf %1, %2 : vector<8x32xf32>
    %4 = arith.truncf %3 : vector<8x32xf32> to vector<8x32xbf16>
    %c0_2 = arith.constant 0 : index
    %c0_3 = arith.constant 0 : index
    %c0_4 = arith.constant 0 : index
    %5 = vector.load %arg3[%c0_2, %c0_3, %c0_4] : memref<1x8x32xf32, #tpu.memory_space<vmem>>, vector<1x8x32xf32>
    %6 = vector.shape_cast %5 : vector<1x8x32xf32> to vector<8x32xf32>
    %7 = arith.truncf %6 : vector<8x32xf32> to vector<8x32xbf16>
    %c0_5 = arith.constant 0 : index
    %c0_6 = arith.constant 0 : index
    %c0_7 = arith.constant 0 : index
    %8 = vector.load %arg4[%c0_5, %c0_6, %c0_7] : memref<1x8x32xf32, #tpu.memory_space<vmem>>, vector<1x8x32xf32>
    %9 = vector.shape_cast %8 : vector<1x8x32xf32> to vector<8x32xf32>
    %10 = arith.truncf %9 : vector<8x32xf32> to vector<8x32xbf16>
    %11 = tpu.iota {dimensions = array<i32: 0>} : vector<8x8xi32>
    %12 = tpu.iota {dimensions = array<i32: 1>} : vector<8x8xi32>
    %13 = arith.cmpi sge, %11, %12 : vector<8x8xi32>
    %14 = vector.extract_strided_slice %4 {offsets = [0, 0], sizes = [8, 8], strides = [1, 1]} : vector<8x32xbf16> to vector<8x8xbf16>
    %15 = vector.extract_strided_slice %7 {offsets = [0, 0], sizes = [8, 8], strides = [1, 1]} : vector<8x32xbf16> to vector<8x8xbf16>
    %16 = vector.extract_strided_slice %10 {offsets = [0, 0], sizes = [8, 8], strides = [1, 1]} : vector<8x32xbf16> to vector<8x8xbf16>
    %cst_8 = arith.constant dense<0.000000e+00> : vector<8x8xf32>
    %17 = tpu.matmul %14, %15, %cst_8 {dimension_numbers = #tpu.dot_dimension_numbers<[1], [1], [0], [0], [0, 0, 1, 0], [], []>} : vector<8x8xbf16>, vector<8x8xbf16>, vector<8x8xf32> -> vector<8x8xf32>
    %cst_9 = arith.constant -1.000000e+20 : f32
    %18 = vector.broadcast %cst_9 : f32 to vector<8x8xf32>
    %19 = arith.select %13, %17, %18 : vector<8x8xi1>, vector<8x8xf32>
    %cst_10 = arith.constant dense<0xFF800000> : vector<8xf32>
    %20 = vector.multi_reduction <maximumf>, %19, %cst_10 [1] : vector<8x8xf32> to vector<8xf32>
    %21 = vector.shape_cast %20 : vector<8xf32> to vector<8x1xf32>
    %22 = vector.broadcast %21 : vector<8x1xf32> to vector<8x8xf32>
    %23 = arith.subf %19, %22 : vector<8x8xf32>
    %24 = math.exp %23 : vector<8x8xf32>
    %cst_11 = arith.constant dense<0.000000e+00> : vector<8xf32>
    %25 = vector.multi_reduction <add>, %24, %cst_11 [1] : vector<8x8xf32> to vector<8xf32>
    %26 = vector.shape_cast %25 : vector<8xf32> to vector<8x1xf32>
    %27 = vector.broadcast %26 : vector<8x1xf32> to vector<8x8xf32>
    %28 = arith.divf %24, %27 : vector<8x8xf32>
    %29 = arith.truncf %28 : vector<8x8xf32> to vector<8x8xbf16>
    %cst_12 = arith.constant dense<0.000000e+00> : vector<8x8xf32>
    %30 = tpu.matmul %29, %16, %cst_12 {dimension_numbers = #tpu.dot_dimension_numbers<[1], [0], [0], [1], [0, 0, 1, 1], [], []>} : vector<8x8xbf16>, vector<8x8xbf16>, vector<8x8xf32> -> vector<8x8xf32>
    %c0_13 = arith.constant 0 : index
    %c0_14 = arith.constant 0 : index
    %c0_15 = arith.constant 0 : index
    %31 = vector.load %arg5[%c0_13, %c0_14, %c0_15] : memref<1x8x32xf32, #tpu.memory_space<vmem>>, vector<1x8x8xf32>
    %32 = vector.shape_cast %31 : vector<1x8x8xf32> to vector<8x8xf32>
    %33 = vector.shape_cast %30 : vector<8x8xf32> to vector<1x8x8xf32>
    tpu.vector_store %arg5[%c0_13, %c0_14, %c0_15], %33 {strides = array<i32>} : memref<1x8x32xf32, #tpu.memory_space<vmem>>, vector<1x8x8xf32>,
    %34 = vector.extract_strided_slice %4 {offsets = [0, 8], sizes = [8, 8], strides = [1, 1]} : vector<8x32xbf16> to vector<8x8xbf16>
    %35 = vector.extract_strided_slice %7 {offsets = [0, 8], sizes = [8, 8], strides = [1, 1]} : vector<8x32xbf16> to vector<8x8xbf16>
    %36 = vector.extract_strided_slice %10 {offsets = [0, 8], sizes = [8, 8], strides = [1, 1]} : vector<8x32xbf16> to vector<8x8xbf16>
    %cst_16 = arith.constant dense<0.000000e+00> : vector<8x8xf32>
    %37 = tpu.matmul %34, %35, %cst_16 {dimension_numbers = #tpu.dot_dimension_numbers<[1], [1], [0], [0], [0, 0, 1, 0], [], []>} : vector<8x8xbf16>, vector<8x8xbf16>, vector<8x8xf32> -> vector<8x8xf32>
    %cst_17 = arith.constant -1.000000e+20 : f32
    %38 = vector.broadcast %cst_17 : f32 to vector<8x8xf32>
    %39 = arith.select %13, %37, %38 : vector<8x8xi1>, vector<8x8xf32>
    %cst_18 = arith.constant dense<0xFF800000> : vector<8xf32>
    %40 = vector.multi_reduction <maximumf>, %39, %cst_18 [1] : vector<8x8xf32> to vector<8xf32>
    %41 = vector.shape_cast %40 : vector<8xf32> to vector<8x1xf32>
    %42 = vector.broadcast %41 : vector<8x1xf32> to vector<8x8xf32>
    %43 = arith.subf %39, %42 : vector<8x8xf32>
    %44 = math.exp %43 : vector<8x8xf32>
    %cst_19 = arith.constant dense<0.000000e+00> : vector<8xf32>
    %45 = vector.multi_reduction <add>, %44, %cst_19 [1] : vector<8x8xf32> to vector<8xf32>
    %46 = vector.shape_cast %45 : vector<8xf32> to vector<8x1xf32>
    %47 = vector.broadcast %46 : vector<8x1xf32> to vector<8x8xf32>
    %48 = arith.divf %44, %47 : vector<8x8xf32>
    %49 = arith.truncf %48 : vector<8x8xf32> to vector<8x8xbf16>
    %cst_20 = arith.constant dense<0.000000e+00> : vector<8x8xf32>
    %50 = tpu.matmul %49, %36, %cst_20 {dimension_numbers = #tpu.dot_dimension_numbers<[1], [0], [0], [1], [0, 0, 1, 1], [], []>} : vector<8x8xbf16>, vector<8x8xbf16>, vector<8x8xf32> -> vector<8x8xf32>
    %c0_21 = arith.constant 0 : index
    %c0_22 = arith.constant 0 : index
    %c8 = arith.constant 8 : index
    %51 = vector.load %arg5[%c0_21, %c0_22, %c8] : memref<1x8x32xf32, #tpu.memory_space<vmem>>, vector<1x8x8xf32>
    %52 = vector.shape_cast %51 : vector<1x8x8xf32> to vector<8x8xf32>
    %53 = vector.shape_cast %50 : vector<8x8xf32> to vector<1x8x8xf32>
    tpu.vector_store %arg5[%c0_21, %c0_22, %c8], %53 {strides = array<i32>} : memref<1x8x32xf32, #tpu.memory_space<vmem>>, vector<1x8x8xf32>,
    %54 = vector.extract_strided_slice %4 {offsets = [0, 16], sizes = [8, 8], strides = [1, 1]} : vector<8x32xbf16> to vector<8x8xbf16>
    %55 = vector.extract_strided_slice %7 {offsets = [0, 16], sizes = [8, 8], strides = [1, 1]} : vector<8x32xbf16> to vector<8x8xbf16>
    %56 = vector.extract_strided_slice %10 {offsets = [0, 16], sizes = [8, 8], strides = [1, 1]} : vector<8x32xbf16> to vector<8x8xbf16>
    %cst_23 = arith.constant dense<0.000000e+00> : vector<8x8xf32>
    %57 = tpu.matmul %54, %55, %cst_23 {dimension_numbers = #tpu.dot_dimension_numbers<[1], [1], [0], [0], [0, 0, 1, 0], [], []>} : vector<8x8xbf16>, vector<8x8xbf16>, vector<8x8xf32> -> vector<8x8xf32>
    %cst_24 = arith.constant -1.000000e+20 : f32
    %58 = vector.broadcast %cst_24 : f32 to vector<8x8xf32>
    %59 = arith.select %13, %57, %58 : vector<8x8xi1>, vector<8x8xf32>
    %cst_25 = arith.constant dense<0xFF800000> : vector<8xf32>
    %60 = vector.multi_reduction <maximumf>, %59, %cst_25 [1] : vector<8x8xf32> to vector<8xf32>
    %61 = vector.shape_cast %60 : vector<8xf32> to vector<8x1xf32>
    %62 = vector.broadcast %61 : vector<8x1xf32> to vector<8x8xf32>
    %63 = arith.subf %59, %62 : vector<8x8xf32>
    %64 = math.exp %63 : vector<8x8xf32>
    %cst_26 = arith.constant dense<0.000000e+00> : vector<8xf32>
    %65 = vector.multi_reduction <add>, %64, %cst_26 [1] : vector<8x8xf32> to vector<8xf32>
    %66 = vector.shape_cast %65 : vector<8xf32> to vector<8x1xf32>
    %67 = vector.broadcast %66 : vector<8x1xf32> to vector<8x8xf32>
    %68 = arith.divf %64, %67 : vector<8x8xf32>
    %69 = arith.truncf %68 : vector<8x8xf32> to vector<8x8xbf16>
    %cst_27 = arith.constant dense<0.000000e+00> : vector<8x8xf32>
    %70 = tpu.matmul %69, %56, %cst_27 {dimension_numbers = #tpu.dot_dimension_numbers<[1], [0], [0], [1], [0, 0, 1, 1], [], []>} : vector<8x8xbf16>, vector<8x8xbf16>, vector<8x8xf32> -> vector<8x8xf32>
    %c0_28 = arith.constant 0 : index
    %c0_29 = arith.constant 0 : index
    %c16 = arith.constant 16 : index
    %71 = vector.load %arg5[%c0_28, %c0_29, %c16] : memref<1x8x32xf32, #tpu.memory_space<vmem>>, vector<1x8x8xf32>
    %72 = vector.shape_cast %71 : vector<1x8x8xf32> to vector<8x8xf32>
    %73 = vector.shape_cast %70 : vector<8x8xf32> to vector<1x8x8xf32>
    tpu.vector_store %arg5[%c0_28, %c0_29, %c16], %73 {strides = array<i32>} : memref<1x8x32xf32, #tpu.memory_space<vmem>>, vector<1x8x8xf32>,
    %74 = vector.extract_strided_slice %4 {offsets = [0, 24], sizes = [8, 8], strides = [1, 1]} : vector<8x32xbf16> to vector<8x8xbf16>
    %75 = vector.extract_strided_slice %7 {offsets = [0, 24], sizes = [8, 8], strides = [1, 1]} : vector<8x32xbf16> to vector<8x8xbf16>
    %76 = vector.extract_strided_slice %10 {offsets = [0, 24], sizes = [8, 8], strides = [1, 1]} : vector<8x32xbf16> to vector<8x8xbf16>
    %cst_30 = arith.constant dense<0.000000e+00> : vector<8x8xf32>
    %77 = tpu.matmul %74, %75, %cst_30 {dimension_numbers = #tpu.dot_dimension_numbers<[1], [1], [0], [0], [0, 0, 1, 0], [], []>} : vector<8x8xbf16>, vector<8x8xbf16>, vector<8x8xf32> -> vector<8x8xf32>
    %cst_31 = arith.constant -1.000000e+20 : f32
    %78 = vector.broadcast %cst_31 : f32 to vector<8x8xf32>
    %79 = arith.select %13, %77, %78 : vector<8x8xi1>, vector<8x8xf32>
    %cst_32 = arith.constant dense<0xFF800000> : vector<8xf32>
    %80 = vector.multi_reduction <maximumf>, %79, %cst_32 [1] : vector<8x8xf32> to vector<8xf32>
    %81 = vector.shape_cast %80 : vector<8xf32> to vector<8x1xf32>
    %82 = vector.broadcast %81 : vector<8x1xf32> to vector<8x8xf32>
    %83 = arith.subf %79, %82 : vector<8x8xf32>
    %84 = math.exp %83 : vector<8x8xf32>
    %cst_33 = arith.constant dense<0.000000e+00> : vector<8xf32>
    %85 = vector.multi_reduction <add>, %84, %cst_33 [1] : vector<8x8xf32> to vector<8xf32>
    %86 = vector.shape_cast %85 : vector<8xf32> to vector<8x1xf32>
    %87 = vector.broadcast %86 : vector<8x1xf32> to vector<8x8xf32>
    %88 = arith.divf %84, %87 : vector<8x8xf32>
    %89 = arith.truncf %88 : vector<8x8xf32> to vector<8x8xbf16>
    %cst_34 = arith.constant dense<0.000000e+00> : vector<8x8xf32>
    %90 = tpu.matmul %89, %76, %cst_34 {dimension_numbers = #tpu.dot_dimension_numbers<[1], [0], [0], [1], [0, 0, 1, 1], [], []>} : vector<8x8xbf16>, vector<8x8xbf16>, vector<8x8xf32> -> vector<8x8xf32>
    %c0_35 = arith.constant 0 : index
    %c0_36 = arith.constant 0 : index
    %c24 = arith.constant 24 : index
    %91 = vector.load %arg5[%c0_35, %c0_36, %c24] : memref<1x8x32xf32, #tpu.memory_space<vmem>>, vector<1x8x8xf32>
    %92 = vector.shape_cast %91 : vector<1x8x8xf32> to vector<8x8xf32>
    %93 = vector.shape_cast %90 : vector<8x8xf32> to vector<1x8x8xf32>
    tpu.vector_store %arg5[%c0_35, %c0_36, %c24], %93 {strides = array<i32>} : memref<1x8x32xf32, #tpu.memory_space<vmem>>, vector<1x8x8xf32>,
    return
  }
  func.func @transform_0(%arg0: i32, %arg1: i32) -> (i32, i32, i32) {
    %c0_i32 = arith.constant 0 : i32
    %c0_i32_0 = arith.constant 0 : i32
    return %arg0, %c0_i32, %arg1 : i32, i32, i32
  }
  func.func @transform_1(%arg0: i32, %arg1: i32) -> (i32, i32, i32) {
    %c0_i32 = arith.constant 0 : i32
    %c0_i32_0 = arith.constant 0 : i32
    return %arg0, %c0_i32, %arg1 : i32, i32, i32
  }
  func.func @transform_2(%arg0: i32, %arg1: i32) -> (i32, i32, i32) {
    %c0_i32 = arith.constant 0 : i32
    %c0_i32_0 = arith.constant 0 : i32
    return %arg0, %c0_i32, %arg1 : i32, i32, i32
  }
  func.func @transform_3(%arg0: i32, %arg1: i32) -> (i32, i32, i32) {
    %c0_i32 = arith.constant 0 : i32
    %c0_i32_0 = arith.constant 0 : i32
    return %arg0, %c0_i32, %arg1 : i32, i32, i32
  }
}

module attributes {stable_mosaic.version = 11 : i64} {
  func.func @_linear_kernel(%arg0: i32, %arg1: i32, %arg2: i32, %arg3: memref<64x8xf32, #tpu.memory_space<vmem>>, %arg4: memref<8x128xbf16, #tpu.memory_space<vmem>>, %arg5: memref<64x128xf32, #tpu.memory_space<vmem>>, %arg6: memref<64x128xf32, #tpu.memory_space<vmem>>) attributes {dimension_semantics = [#tpu.dimension_semantics<parallel>, #tpu.dimension_semantics<parallel>, #tpu.dimension_semantics<arbitrary>], iteration_bounds = array<i64: 1, 1, 1>, scalar_prefetch = 0 : i64, scratch_operands = 1 : i64, tpu.core_type = #tpu.core_type<tc>, window_params = [{transform_indices = @transform_0, window_bounds = array<i64: 64, 8>}, {transform_indices = @transform_1, window_bounds = array<i64: 8, 128>}, {transform_indices = @transform_2, window_bounds = array<i64: 64, 128>}]} {
    %c0_i32 = arith.constant 0 : i32
    %0 = arith.cmpi eq, %arg2, %c0_i32 : i32
    %1 = arith.extui %0 : i1 to i32
    %c0_i32_0 = arith.constant 0 : i32
    %2 = arith.cmpi ne, %1, %c0_i32_0 : i32
    scf.if %2 {
      %cst_10 = arith.constant 0.000000e+00 : f32
      %13 = vector.broadcast %cst_10 : f32 to vector<64x128xf32>
      %c0_11 = arith.constant 0 : index
      %c0_12 = arith.constant 0 : index
      %14 = vector.load %arg6[%c0_11, %c0_12] : memref<64x128xf32, #tpu.memory_space<vmem>>, vector<64x128xf32>
      tpu.vector_store %arg6[%c0_11, %c0_12], %13 {strides = array<i32>} : memref<64x128xf32, #tpu.memory_space<vmem>>, vector<64x128xf32>,
    } else {
    }
    %c0 = arith.constant 0 : index
    %c0_1 = arith.constant 0 : index
    %3 = vector.load %arg3[%c0, %c0_1] : memref<64x8xf32, #tpu.memory_space<vmem>>, vector<64x8xf32>
    %c0_2 = arith.constant 0 : index
    %c0_3 = arith.constant 0 : index
    %4 = vector.load %arg4[%c0_2, %c0_3] : memref<8x128xbf16, #tpu.memory_space<vmem>>, vector<8x128xbf16>
    %5 = arith.truncf %3 : vector<64x8xf32> to vector<64x8xbf16>
    %c0_4 = arith.constant 0 : index
    %c0_5 = arith.constant 0 : index
    %6 = vector.load %arg6[%c0_4, %c0_5] : memref<64x128xf32, #tpu.memory_space<vmem>>, vector<64x128xf32>
    %cst = arith.constant dense<0.000000e+00> : vector<64x128xf32>
    %7 = tpu.matmul %5, %4, %cst {dimension_numbers = #tpu.dot_dimension_numbers<[1], [0], [0], [1], [0, 0, 1, 1], [], []>} : vector<64x8xbf16>, vector<8x128xbf16>, vector<64x128xf32> -> vector<64x128xf32>
    %8 = arith.addf %6, %7 : vector<64x128xf32>
    %c0_6 = arith.constant 0 : index
    %c0_7 = arith.constant 0 : index
    %9 = vector.load %arg6[%c0_6, %c0_7] : memref<64x128xf32, #tpu.memory_space<vmem>>, vector<64x128xf32>
    tpu.vector_store %arg6[%c0_6, %c0_7], %8 {strides = array<i32>} : memref<64x128xf32, #tpu.memory_space<vmem>>, vector<64x128xf32>,
    %c0_i32_8 = arith.constant 0 : i32
    %10 = arith.cmpi eq, %arg2, %c0_i32_8 : i32
    %11 = arith.extui %10 : i1 to i32
    %c0_i32_9 = arith.constant 0 : i32
    %12 = arith.cmpi ne, %11, %c0_i32_9 : i32
    scf.if %12 {
      %c0_10 = arith.constant 0 : index
      %c0_11 = arith.constant 0 : index
      %13 = vector.load %arg6[%c0_10, %c0_11] : memref<64x128xf32, #tpu.memory_space<vmem>>, vector<64x128xf32>
      %c0_12 = arith.constant 0 : index
      %c0_13 = arith.constant 0 : index
      %14 = vector.load %arg5[%c0_12, %c0_13] : memref<64x128xf32, #tpu.memory_space<vmem>>, vector<64x128xf32>
      tpu.vector_store %arg5[%c0_12, %c0_13], %13 {strides = array<i32>} : memref<64x128xf32, #tpu.memory_space<vmem>>, vector<64x128xf32>,
    } else {
    }
    return
  }
  func.func @transform_0(%arg0: i32, %arg1: i32, %arg2: i32) -> (i32, i32) {
    %c0_i32 = arith.constant 0 : i32
    return %arg0, %arg2 : i32, i32
  }
  func.func @transform_1(%arg0: i32, %arg1: i32, %arg2: i32) -> (i32, i32) {
    %c0_i32 = arith.constant 0 : i32
    return %arg2, %arg1 : i32, i32
  }
  func.func @transform_2(%arg0: i32, %arg1: i32, %arg2: i32) -> (i32, i32) {
    %c0_i32 = arith.constant 0 : i32
    return %arg0, %arg1 : i32, i32
  }
}

module attributes {stable_mosaic.version = 11 : i64} {
  func.func @_linear_res_ln_kernel(%arg0: i32, %arg1: i32, %arg2: memref<16x32xf32, #tpu.memory_space<vmem>>, %arg3: memref<32x32xbf16, #tpu.memory_space<vmem>>, %arg4: memref<1x32xf32, #tpu.memory_space<vmem>>, %arg5: memref<16x32xf32, #tpu.memory_space<vmem>>, %arg6: memref<1x32xf32, #tpu.memory_space<vmem>>, %arg7: memref<1x32xf32, #tpu.memory_space<vmem>>, %arg8: memref<16x32xf32, #tpu.memory_space<vmem>>, %arg9: memref<16x32xf32, #tpu.memory_space<vmem>>) attributes {dimension_semantics = [#tpu.dimension_semantics<parallel>, #tpu.dimension_semantics<arbitrary>], iteration_bounds = array<i64: 1, 1>, scalar_prefetch = 0 : i64, scratch_operands = 1 : i64, tpu.core_type = #tpu.core_type<tc>, window_params = [{transform_indices = @transform_0, window_bounds = array<i64: 16, 32>}, {transform_indices = @transform_1, window_bounds = array<i64: 32, 32>}, {pipeline_mode = #tpu.pipeline_mode<synchronous>, transform_indices = @transform_2, window_bounds = array<i64: 1, 32>}, {transform_indices = @transform_3, window_bounds = array<i64: 16, 32>}, {pipeline_mode = #tpu.pipeline_mode<synchronous>, transform_indices = @transform_4, window_bounds = array<i64: 1, 32>}, {pipeline_mode = #tpu.pipeline_mode<synchronous>, transform_indices = @transform_5, window_bounds = array<i64: 1, 32>}, {transform_indices = @transform_6, window_bounds = array<i64: 16, 32>}]} {
    %c0_i32 = arith.constant 0 : i32
    %0 = arith.cmpi eq, %arg1, %c0_i32 : i32
    %1 = arith.extui %0 : i1 to i32
    %c0_i32_0 = arith.constant 0 : i32
    %2 = arith.cmpi ne, %1, %c0_i32_0 : i32
    scf.if %2 {
      %cst_10 = arith.constant 0.000000e+00 : f32
      %13 = vector.broadcast %cst_10 : f32 to vector<16x32xf32>
      %c0_11 = arith.constant 0 : index
      %c0_12 = arith.constant 0 : index
      %14 = vector.load %arg9[%c0_11, %c0_12] : memref<16x32xf32, #tpu.memory_space<vmem>>, vector<16x32xf32>
      tpu.vector_store %arg9[%c0_11, %c0_12], %13 {strides = array<i32>} : memref<16x32xf32, #tpu.memory_space<vmem>>, vector<16x32xf32>,
    } else {
    }
    %c0 = arith.constant 0 : index
    %c0_1 = arith.constant 0 : index
    %3 = vector.load %arg2[%c0, %c0_1] : memref<16x32xf32, #tpu.memory_space<vmem>>, vector<16x32xf32>
    %c0_2 = arith.constant 0 : index
    %c0_3 = arith.constant 0 : index
    %4 = vector.load %arg3[%c0_2, %c0_3] : memref<32x32xbf16, #tpu.memory_space<vmem>>, vector<32x32xbf16>
    %5 = arith.truncf %3 : vector<16x32xf32> to vector<16x32xbf16>
    %c0_4 = arith.constant 0 : index
    %c0_5 = arith.constant 0 : index
    %6 = vector.load %arg9[%c0_4, %c0_5] : memref<16x32xf32, #tpu.memory_space<vmem>>, vector<16x32xf32>
    %cst = arith.constant dense<0.000000e+00> : vector<16x32xf32>
    %7 = tpu.matmul %5, %4, %cst {dimension_numbers = #tpu.dot_dimension_numbers<[1], [0], [0], [1], [0, 0, 1, 1], [], []>} : vector<16x32xbf16>, vector<32x32xbf16>, vector<16x32xf32> -> vector<16x32xf32>
    %8 = arith.addf %6, %7 : vector<16x32xf32>
    %c0_6 = arith.constant 0 : index
    %c0_7 = arith.constant 0 : index
    %9 = vector.load %arg9[%c0_6, %c0_7] : memref<16x32xf32, #tpu.memory_space<vmem>>, vector<16x32xf32>
    tpu.vector_store %arg9[%c0_6, %c0_7], %8 {strides = array<i32>} : memref<16x32xf32, #tpu.memory_space<vmem>>, vector<16x32xf32>,
    %c0_i32_8 = arith.constant 0 : i32
    %10 = arith.cmpi eq, %arg1, %c0_i32_8 : i32
    %11 = arith.extui %10 : i1 to i32
    %c0_i32_9 = arith.constant 0 : i32
    %12 = arith.cmpi ne, %11, %c0_i32_9 : i32
    scf.if %12 {
      %c0_10 = arith.constant 0 : index
      %c0_11 = arith.constant 0 : index
      %13 = vector.load %arg9[%c0_10, %c0_11] : memref<16x32xf32, #tpu.memory_space<vmem>>, vector<16x32xf32>
      %c0_12 = arith.constant 0 : index
      %c0_13 = arith.constant 0 : index
      %14 = vector.load %arg4[%c0_12, %c0_13] : memref<1x32xf32, #tpu.memory_space<vmem>>, vector<1x32xf32>
      %15 = vector.broadcast %14 : vector<1x32xf32> to vector<16x32xf32>
      %16 = arith.addf %13, %15 : vector<16x32xf32>
      %c0_14 = arith.constant 0 : index
      %c0_15 = arith.constant 0 : index
      %17 = vector.load %arg5[%c0_14, %c0_15] : memref<16x32xf32, #tpu.memory_space<vmem>>, vector<16x32xf32>
      %18 = arith.addf %16, %17 : vector<16x32xf32>
      %cst_16 = arith.constant dense<0.000000e+00> : vector<16xf32>
      %19 = vector.multi_reduction <add>, %18, %cst_16 [1] : vector<16x32xf32> to vector<16xf32>
      %20 = vector.shape_cast %19 : vector<16xf32> to vector<16x1xf32>
      %cst_17 = arith.constant 3.200000e+01 : f32
      %21 = vector.broadcast %cst_17 : f32 to vector<16x1xf32>
      %22 = arith.divf %20, %21 : vector<16x1xf32>
      %23 = vector.broadcast %22 : vector<16x1xf32> to vector<16x32xf32>
      %24 = arith.subf %18, %23 : vector<16x32xf32>
      %25 = arith.mulf %24, %24 : vector<16x32xf32>
      %cst_18 = arith.constant dense<0.000000e+00> : vector<16xf32>
      %26 = vector.multi_reduction <add>, %25, %cst_18 [1] : vector<16x32xf32> to vector<16xf32>
      %27 = vector.shape_cast %26 : vector<16xf32> to vector<16x1xf32>
      %cst_19 = arith.constant 3.200000e+01 : f32
      %28 = vector.broadcast %cst_19 : f32 to vector<16x1xf32>
      %29 = arith.divf %27, %28 : vector<16x1xf32>
      %30 = vector.broadcast %22 : vector<16x1xf32> to vector<16x32xf32>
      %31 = arith.subf %18, %30 : vector<16x32xf32>
      %cst_20 = arith.constant 9.99999974E-6 : f32
      %32 = vector.broadcast %cst_20 : f32 to vector<16x1xf32>
      %33 = arith.addf %29, %32 : vector<16x1xf32>
      %34 = math.rsqrt %33 : vector<16x1xf32>
      %35 = vector.broadcast %34 : vector<16x1xf32> to vector<16x32xf32>
      %36 = arith.mulf %31, %35 : vector<16x32xf32>
      %c0_21 = arith.constant 0 : index
      %c0_22 = arith.constant 0 : index
      %37 = vector.load %arg6[%c0_21, %c0_22] : memref<1x32xf32, #tpu.memory_space<vmem>>, vector<1x32xf32>
      %38 = vector.broadcast %37 : vector<1x32xf32> to vector<16x32xf32>
      %39 = arith.mulf %36, %38 : vector<16x32xf32>
      %c0_23 = arith.constant 0 : index
      %c0_24 = arith.constant 0 : index
      %40 = vector.load %arg7[%c0_23, %c0_24] : memref<1x32xf32, #tpu.memory_space<vmem>>, vector<1x32xf32>
      %41 = vector.broadcast %40 : vector<1x32xf32> to vector<16x32xf32>
      %42 = arith.addf %39, %41 : vector<16x32xf32>
      %c0_25 = arith.constant 0 : index
      %c0_26 = arith.constant 0 : index
      %43 = vector.load %arg8[%c0_25, %c0_26] : memref<16x32xf32, #tpu.memory_space<vmem>>, vector<16x32xf32>
      tpu.vector_store %arg8[%c0_25, %c0_26], %42 {strides = array<i32>} : memref<16x32xf32, #tpu.memory_space<vmem>>, vector<16x32xf32>,
    } else {
    }
    return
  }
  func.func @transform_0(%arg0: i32, %arg1: i32) -> (i32, i32) {
    %c0_i32 = arith.constant 0 : i32
    return %arg0, %arg1 : i32, i32
  }
  func.func @transform_1(%arg0: i32, %arg1: i32) -> (i32, i32) {
    %c0_i32 = arith.constant 0 : i32
    %c0_i32_0 = arith.constant 0 : i32
    return %arg1, %c0_i32 : i32, i32
  }
  func.func @transform_2(%arg0: i32, %arg1: i32) -> (i32, i32) {
    %c0_i32 = arith.constant 0 : i32
    %c0_i32_0 = arith.constant 0 : i32
    %c0_i32_1 = arith.constant 0 : i32
    return %c0_i32, %c0_i32_0 : i32, i32
  }
  func.func @transform_3(%arg0: i32, %arg1: i32) -> (i32, i32) {
    %c0_i32 = arith.constant 0 : i32
    %c0_i32_0 = arith.constant 0 : i32
    return %arg0, %c0_i32 : i32, i32
  }
  func.func @transform_4(%arg0: i32, %arg1: i32) -> (i32, i32) {
    %c0_i32 = arith.constant 0 : i32
    %c0_i32_0 = arith.constant 0 : i32
    %c0_i32_1 = arith.constant 0 : i32
    return %c0_i32, %c0_i32_0 : i32, i32
  }
  func.func @transform_5(%arg0: i32, %arg1: i32) -> (i32, i32) {
    %c0_i32 = arith.constant 0 : i32
    %c0_i32_0 = arith.constant 0 : i32
    %c0_i32_1 = arith.constant 0 : i32
    return %c0_i32, %c0_i32_0 : i32, i32
  }
  func.func @transform_6(%arg0: i32, %arg1: i32) -> (i32, i32) {
    %c0_i32 = arith.constant 0 : i32
    %c0_i32_0 = arith.constant 0 : i32
    return %arg0, %c0_i32 : i32, i32
  }
}

module attributes {stable_mosaic.version = 11 : i64} {
  func.func @_linear_kernel(%arg0: i32, %arg1: i32, %arg2: i32, %arg3: memref<16x32xf32, #tpu.memory_space<vmem>>, %arg4: memref<32x64xbf16, #tpu.memory_space<vmem>>, %arg5: memref<1x64xf32, #tpu.memory_space<vmem>>, %arg6: memref<16x64xf32, #tpu.memory_space<vmem>>, %arg7: memref<16x64xf32, #tpu.memory_space<vmem>>) attributes {dimension_semantics = [#tpu.dimension_semantics<parallel>, #tpu.dimension_semantics<parallel>, #tpu.dimension_semantics<arbitrary>], iteration_bounds = array<i64: 1, 1, 1>, scalar_prefetch = 0 : i64, scratch_operands = 1 : i64, tpu.core_type = #tpu.core_type<tc>, window_params = [{transform_indices = @transform_0, window_bounds = array<i64: 16, 32>}, {transform_indices = @transform_1, window_bounds = array<i64: 32, 64>}, {transform_indices = @transform_2, window_bounds = array<i64: 1, 64>}, {transform_indices = @transform_3, window_bounds = array<i64: 16, 64>}]} {
    %c0_i32 = arith.constant 0 : i32
    %0 = arith.cmpi eq, %arg2, %c0_i32 : i32
    %1 = arith.extui %0 : i1 to i32
    %c0_i32_0 = arith.constant 0 : i32
    %2 = arith.cmpi ne, %1, %c0_i32_0 : i32
    scf.if %2 {
      %cst_10 = arith.constant 0.000000e+00 : f32
      %13 = vector.broadcast %cst_10 : f32 to vector<16x64xf32>
      %c0_11 = arith.constant 0 : index
      %c0_12 = arith.constant 0 : index
      %14 = vector.load %arg7[%c0_11, %c0_12] : memref<16x64xf32, #tpu.memory_space<vmem>>, vector<16x64xf32>
      tpu.vector_store %arg7[%c0_11, %c0_12], %13 {strides = array<i32>} : memref<16x64xf32, #tpu.memory_space<vmem>>, vector<16x64xf32>,
    } else {
    }
    %c0 = arith.constant 0 : index
    %c0_1 = arith.constant 0 : index
    %3 = vector.load %arg3[%c0, %c0_1] : memref<16x32xf32, #tpu.memory_space<vmem>>, vector<16x32xf32>
    %c0_2 = arith.constant 0 : index
    %c0_3 = arith.constant 0 : index
    %4 = vector.load %arg4[%c0_2, %c0_3] : memref<32x64xbf16, #tpu.memory_space<vmem>>, vector<32x64xbf16>
    %5 = arith.truncf %3 : vector<16x32xf32> to vector<16x32xbf16>
    %c0_4 = arith.constant 0 : index
    %c0_5 = arith.constant 0 : index
    %6 = vector.load %arg7[%c0_4, %c0_5] : memref<16x64xf32, #tpu.memory_space<vmem>>, vector<16x64xf32>
    %cst = arith.constant dense<0.000000e+00> : vector<16x64xf32>
    %7 = tpu.matmul %5, %4, %cst {dimension_numbers = #tpu.dot_dimension_numbers<[1], [0], [0], [1], [0, 0, 1, 1], [], []>} : vector<16x32xbf16>, vector<32x64xbf16>, vector<16x64xf32> -> vector<16x64xf32>
    %8 = arith.addf %6, %7 : vector<16x64xf32>
    %c0_6 = arith.constant 0 : index
    %c0_7 = arith.constant 0 : index
    %9 = vector.load %arg7[%c0_6, %c0_7] : memref<16x64xf32, #tpu.memory_space<vmem>>, vector<16x64xf32>
    tpu.vector_store %arg7[%c0_6, %c0_7], %8 {strides = array<i32>} : memref<16x64xf32, #tpu.memory_space<vmem>>, vector<16x64xf32>,
    %c0_i32_8 = arith.constant 0 : i32
    %10 = arith.cmpi eq, %arg2, %c0_i32_8 : i32
    %11 = arith.extui %10 : i1 to i32
    %c0_i32_9 = arith.constant 0 : i32
    %12 = arith.cmpi ne, %11, %c0_i32_9 : i32
    scf.if %12 {
      %c0_10 = arith.constant 0 : index
      %c0_11 = arith.constant 0 : index
      %13 = vector.load %arg7[%c0_10, %c0_11] : memref<16x64xf32, #tpu.memory_space<vmem>>, vector<16x64xf32>
      %c0_12 = arith.constant 0 : index
      %c0_13 = arith.constant 0 : index
      %14 = vector.load %arg5[%c0_12, %c0_13] : memref<1x64xf32, #tpu.memory_space<vmem>>, vector<1x64xf32>
      %15 = vector.broadcast %14 : vector<1x64xf32> to vector<16x64xf32>
      %16 = arith.addf %13, %15 : vector<16x64xf32>
      %cst_14 = arith.constant 0.000000e+00 : f32
      %17 = vector.broadcast %cst_14 : f32 to vector<16x64xf32>
      %18 = arith.maximumf %16, %17 : vector<16x64xf32>
      %c0_15 = arith.constant 0 : index
      %c0_16 = arith.constant 0 : index
      %19 = vector.load %arg6[%c0_15, %c0_16] : memref<16x64xf32, #tpu.memory_space<vmem>>, vector<16x64xf32>
      tpu.vector_store %arg6[%c0_15, %c0_16], %18 {strides = array<i32>} : memref<16x64xf32, #tpu.memory_space<vmem>>, vector<16x64xf32>,
    } else {
    }
    return
  }
  func.func @transform_0(%arg0: i32, %arg1: i32, %arg2: i32) -> (i32, i32) {
    %c0_i32 = arith.constant 0 : i32
    return %arg0, %arg2 : i32, i32
  }
  func.func @transform_1(%arg0: i32, %arg1: i32, %arg2: i32) -> (i32, i32) {
    %c0_i32 = arith.constant 0 : i32
    return %arg2, %arg1 : i32, i32
  }
  func.func @transform_2(%arg0: i32, %arg1: i32, %arg2: i32) -> (i32, i32) {
    %c0_i32 = arith.constant 0 : i32
    %c0_i32_0 = arith.constant 0 : i32
    return %c0_i32, %arg1 : i32, i32
  }
  func.func @transform_3(%arg0: i32, %arg1: i32, %arg2: i32) -> (i32, i32) {
    %c0_i32 = arith.constant 0 : i32
    return %arg0, %arg1 : i32, i32
  }
}

module attributes {stable_mosaic.version = 11 : i64} {
  func.func @_linear_res_ln_kernel(%arg0: i32, %arg1: i32, %arg2: memref<16x64xf32, #tpu.memory_space<vmem>>, %arg3: memref<64x32xbf16, #tpu.memory_space<vmem>>, %arg4: memref<1x32xf32, #tpu.memory_space<vmem>>, %arg5: memref<16x32xf32, #tpu.memory_space<vmem>>, %arg6: memref<1x32xf32, #tpu.memory_space<vmem>>, %arg7: memref<1x32xf32, #tpu.memory_space<vmem>>, %arg8: memref<16x32xf32, #tpu.memory_space<vmem>>, %arg9: memref<16x32xf32, #tpu.memory_space<vmem>>) attributes {dimension_semantics = [#tpu.dimension_semantics<parallel>, #tpu.dimension_semantics<arbitrary>], iteration_bounds = array<i64: 1, 1>, scalar_prefetch = 0 : i64, scratch_operands = 1 : i64, tpu.core_type = #tpu.core_type<tc>, window_params = [{transform_indices = @transform_0, window_bounds = array<i64: 16, 64>}, {transform_indices = @transform_1, window_bounds = array<i64: 64, 32>}, {pipeline_mode = #tpu.pipeline_mode<synchronous>, transform_indices = @transform_2, window_bounds = array<i64: 1, 32>}, {transform_indices = @transform_3, window_bounds = array<i64: 16, 32>}, {pipeline_mode = #tpu.pipeline_mode<synchronous>, transform_indices = @transform_4, window_bounds = array<i64: 1, 32>}, {pipeline_mode = #tpu.pipeline_mode<synchronous>, transform_indices = @transform_5, window_bounds = array<i64: 1, 32>}, {transform_indices = @transform_6, window_bounds = array<i64: 16, 32>}]} {
    %c0_i32 = arith.constant 0 : i32
    %0 = arith.cmpi eq, %arg1, %c0_i32 : i32
    %1 = arith.extui %0 : i1 to i32
    %c0_i32_0 = arith.constant 0 : i32
    %2 = arith.cmpi ne, %1, %c0_i32_0 : i32
    scf.if %2 {
      %cst_10 = arith.constant 0.000000e+00 : f32
      %13 = vector.broadcast %cst_10 : f32 to vector<16x32xf32>
      %c0_11 = arith.constant 0 : index
      %c0_12 = arith.constant 0 : index
      %14 = vector.load %arg9[%c0_11, %c0_12] : memref<16x32xf32, #tpu.memory_space<vmem>>, vector<16x32xf32>
      tpu.vector_store %arg9[%c0_11, %c0_12], %13 {strides = array<i32>} : memref<16x32xf32, #tpu.memory_space<vmem>>, vector<16x32xf32>,
    } else {
    }
    %c0 = arith.constant 0 : index
    %c0_1 = arith.constant 0 : index
    %3 = vector.load %arg2[%c0, %c0_1] : memref<16x64xf32, #tpu.memory_space<vmem>>, vector<16x64xf32>
    %c0_2 = arith.constant 0 : index
    %c0_3 = arith.constant 0 : index
    %4 = vector.load %arg3[%c0_2, %c0_3] : memref<64x32xbf16, #tpu.memory_space<vmem>>, vector<64x32xbf16>
    %5 = arith.truncf %3 : vector<16x64xf32> to vector<16x64xbf16>
    %c0_4 = arith.constant 0 : index
    %c0_5 = arith.constant 0 : index
    %6 = vector.load %arg9[%c0_4, %c0_5] : memref<16x32xf32, #tpu.memory_space<vmem>>, vector<16x32xf32>
    %cst = arith.constant dense<0.000000e+00> : vector<16x32xf32>
    %7 = tpu.matmul %5, %4, %cst {dimension_numbers = #tpu.dot_dimension_numbers<[1], [0], [0], [1], [0, 0, 1, 1], [], []>} : vector<16x64xbf16>, vector<64x32xbf16>, vector<16x32xf32> -> vector<16x32xf32>
    %8 = arith.addf %6, %7 : vector<16x32xf32>
    %c0_6 = arith.constant 0 : index
    %c0_7 = arith.constant 0 : index
    %9 = vector.load %arg9[%c0_6, %c0_7] : memref<16x32xf32, #tpu.memory_space<vmem>>, vector<16x32xf32>
    tpu.vector_store %arg9[%c0_6, %c0_7], %8 {strides = array<i32>} : memref<16x32xf32, #tpu.memory_space<vmem>>, vector<16x32xf32>,
    %c0_i32_8 = arith.constant 0 : i32
    %10 = arith.cmpi eq, %arg1, %c0_i32_8 : i32
    %11 = arith.extui %10 : i1 to i32
    %c0_i32_9 = arith.constant 0 : i32
    %12 = arith.cmpi ne, %11, %c0_i32_9 : i32
    scf.if %12 {
      %c0_10 = arith.constant 0 : index
      %c0_11 = arith.constant 0 : index
      %13 = vector.load %arg9[%c0_10, %c0_11] : memref<16x32xf32, #tpu.memory_space<vmem>>, vector<16x32xf32>
      %c0_12 = arith.constant 0 : index
      %c0_13 = arith.constant 0 : index
      %14 = vector.load %arg4[%c0_12, %c0_13] : memref<1x32xf32, #tpu.memory_space<vmem>>, vector<1x32xf32>
      %15 = vector.broadcast %14 : vector<1x32xf32> to vector<16x32xf32>
      %16 = arith.addf %13, %15 : vector<16x32xf32>
      %c0_14 = arith.constant 0 : index
      %c0_15 = arith.constant 0 : index
      %17 = vector.load %arg5[%c0_14, %c0_15] : memref<16x32xf32, #tpu.memory_space<vmem>>, vector<16x32xf32>
      %18 = arith.addf %16, %17 : vector<16x32xf32>
      %cst_16 = arith.constant dense<0.000000e+00> : vector<16xf32>
      %19 = vector.multi_reduction <add>, %18, %cst_16 [1] : vector<16x32xf32> to vector<16xf32>
      %20 = vector.shape_cast %19 : vector<16xf32> to vector<16x1xf32>
      %cst_17 = arith.constant 3.200000e+01 : f32
      %21 = vector.broadcast %cst_17 : f32 to vector<16x1xf32>
      %22 = arith.divf %20, %21 : vector<16x1xf32>
      %23 = vector.broadcast %22 : vector<16x1xf32> to vector<16x32xf32>
      %24 = arith.subf %18, %23 : vector<16x32xf32>
      %25 = arith.mulf %24, %24 : vector<16x32xf32>
      %cst_18 = arith.constant dense<0.000000e+00> : vector<16xf32>
      %26 = vector.multi_reduction <add>, %25, %cst_18 [1] : vector<16x32xf32> to vector<16xf32>
      %27 = vector.shape_cast %26 : vector<16xf32> to vector<16x1xf32>
      %cst_19 = arith.constant 3.200000e+01 : f32
      %28 = vector.broadcast %cst_19 : f32 to vector<16x1xf32>
      %29 = arith.divf %27, %28 : vector<16x1xf32>
      %30 = vector.broadcast %22 : vector<16x1xf32> to vector<16x32xf32>
      %31 = arith.subf %18, %30 : vector<16x32xf32>
      %cst_20 = arith.constant 9.99999974E-6 : f32
      %32 = vector.broadcast %cst_20 : f32 to vector<16x1xf32>
      %33 = arith.addf %29, %32 : vector<16x1xf32>
      %34 = math.rsqrt %33 : vector<16x1xf32>
      %35 = vector.broadcast %34 : vector<16x1xf32> to vector<16x32xf32>
      %36 = arith.mulf %31, %35 : vector<16x32xf32>
      %c0_21 = arith.constant 0 : index
      %c0_22 = arith.constant 0 : index
      %37 = vector.load %arg6[%c0_21, %c0_22] : memref<1x32xf32, #tpu.memory_space<vmem>>, vector<1x32xf32>
      %38 = vector.broadcast %37 : vector<1x32xf32> to vector<16x32xf32>
      %39 = arith.mulf %36, %38 : vector<16x32xf32>
      %c0_23 = arith.constant 0 : index
      %c0_24 = arith.constant 0 : index
      %40 = vector.load %arg7[%c0_23, %c0_24] : memref<1x32xf32, #tpu.memory_space<vmem>>, vector<1x32xf32>
      %41 = vector.broadcast %40 : vector<1x32xf32> to vector<16x32xf32>
      %42 = arith.addf %39, %41 : vector<16x32xf32>
      %c0_25 = arith.constant 0 : index
      %c0_26 = arith.constant 0 : index
      %43 = vector.load %arg8[%c0_25, %c0_26] : memref<16x32xf32, #tpu.memory_space<vmem>>, vector<16x32xf32>
      tpu.vector_store %arg8[%c0_25, %c0_26], %42 {strides = array<i32>} : memref<16x32xf32, #tpu.memory_space<vmem>>, vector<16x32xf32>,
    } else {
    }
    return
  }
  func.func @transform_0(%arg0: i32, %arg1: i32) -> (i32, i32) {
    %c0_i32 = arith.constant 0 : i32
    return %arg0, %arg1 : i32, i32
  }
  func.func @transform_1(%arg0: i32, %arg1: i32) -> (i32, i32) {
    %c0_i32 = arith.constant 0 : i32
    %c0_i32_0 = arith.constant 0 : i32
    return %arg1, %c0_i32 : i32, i32
  }
  func.func @transform_2(%arg0: i32, %arg1: i32) -> (i32, i32) {
    %c0_i32 = arith.constant 0 : i32
    %c0_i32_0 = arith.constant 0 : i32
    %c0_i32_1 = arith.constant 0 : i32
    return %c0_i32, %c0_i32_0 : i32, i32
  }
  func.func @transform_3(%arg0: i32, %arg1: i32) -> (i32, i32) {
    %c0_i32 = arith.constant 0 : i32
    %c0_i32_0 = arith.constant 0 : i32
    return %arg0, %c0_i32 : i32, i32
  }
  func.func @transform_4(%arg0: i32, %arg1: i32) -> (i32, i32) {
    %c0_i32 = arith.constant 0 : i32
    %c0_i32_0 = arith.constant 0 : i32
    %c0_i32_1 = arith.constant 0 : i32
    return %c0_i32, %c0_i32_0 : i32, i32
  }
  func.func @transform_5(%arg0: i32, %arg1: i32) -> (i32, i32) {
    %c0_i32 = arith.constant 0 : i32
    %c0_i32_0 = arith.constant 0 : i32
    %c0_i32_1 = arith.constant 0 : i32
    return %c0_i32, %c0_i32_0 : i32, i32
  }
  func.func @transform_6(%arg0: i32, %arg1: i32) -> (i32, i32) {
    %c0_i32 = arith.constant 0 : i32
    %c0_i32_0 = arith.constant 0 : i32
    return %arg0, %c0_i32 : i32, i32
  }
}

module attributes {stable_mosaic.version = 11 : i64} {
  func.func @_linear_kernel(%arg0: i32, %arg1: i32, %arg2: i32, %arg3: memref<16x32xf32, #tpu.memory_space<vmem>>, %arg4: memref<32x50xbf16, #tpu.memory_space<vmem>>, %arg5: memref<1x50xf32, #tpu.memory_space<vmem>>, %arg6: memref<16x50xf32, #tpu.memory_space<vmem>>, %arg7: memref<16x50xf32, #tpu.memory_space<vmem>>) attributes {dimension_semantics = [#tpu.dimension_semantics<parallel>, #tpu.dimension_semantics<parallel>, #tpu.dimension_semantics<arbitrary>], iteration_bounds = array<i64: 1, 1, 1>, scalar_prefetch = 0 : i64, scratch_operands = 1 : i64, tpu.core_type = #tpu.core_type<tc>, window_params = [{transform_indices = @transform_0, window_bounds = array<i64: 16, 32>}, {transform_indices = @transform_1, window_bounds = array<i64: 32, 50>}, {transform_indices = @transform_2, window_bounds = array<i64: 1, 50>}, {transform_indices = @transform_3, window_bounds = array<i64: 16, 50>}]} {
    %c0_i32 = arith.constant 0 : i32
    %0 = arith.cmpi eq, %arg2, %c0_i32 : i32
    %1 = arith.extui %0 : i1 to i32
    %c0_i32_0 = arith.constant 0 : i32
    %2 = arith.cmpi ne, %1, %c0_i32_0 : i32
    scf.if %2 {
      %cst_10 = arith.constant 0.000000e+00 : f32
      %13 = vector.broadcast %cst_10 : f32 to vector<16x50xf32>
      %c0_11 = arith.constant 0 : index
      %c0_12 = arith.constant 0 : index
      %14 = vector.load %arg7[%c0_11, %c0_12] : memref<16x50xf32, #tpu.memory_space<vmem>>, vector<16x50xf32>
      tpu.vector_store %arg7[%c0_11, %c0_12], %13 {strides = array<i32>} : memref<16x50xf32, #tpu.memory_space<vmem>>, vector<16x50xf32>,
    } else {
    }
    %c0 = arith.constant 0 : index
    %c0_1 = arith.constant 0 : index
    %3 = vector.load %arg3[%c0, %c0_1] : memref<16x32xf32, #tpu.memory_space<vmem>>, vector<16x32xf32>
    %c0_2 = arith.constant 0 : index
    %c0_3 = arith.constant 0 : index
    %4 = vector.load %arg4[%c0_2, %c0_3] : memref<32x50xbf16, #tpu.memory_space<vmem>>, vector<32x50xbf16>
    %5 = arith.truncf %3 : vector<16x32xf32> to vector<16x32xbf16>
    %c0_4 = arith.constant 0 : index
    %c0_5 = arith.constant 0 : index
    %6 = vector.load %arg7[%c0_4, %c0_5] : memref<16x50xf32, #tpu.memory_space<vmem>>, vector<16x50xf32>
    %cst = arith.constant dense<0.000000e+00> : vector<16x50xf32>
    %7 = tpu.matmul %5, %4, %cst {dimension_numbers = #tpu.dot_dimension_numbers<[1], [0], [0], [1], [0, 0, 1, 1], [], []>} : vector<16x32xbf16>, vector<32x50xbf16>, vector<16x50xf32> -> vector<16x50xf32>
    %8 = arith.addf %6, %7 : vector<16x50xf32>
    %c0_6 = arith.constant 0 : index
    %c0_7 = arith.constant 0 : index
    %9 = vector.load %arg7[%c0_6, %c0_7] : memref<16x50xf32, #tpu.memory_space<vmem>>, vector<16x50xf32>
    tpu.vector_store %arg7[%c0_6, %c0_7], %8 {strides = array<i32>} : memref<16x50xf32, #tpu.memory_space<vmem>>, vector<16x50xf32>,
    %c0_i32_8 = arith.constant 0 : i32
    %10 = arith.cmpi eq, %arg2, %c0_i32_8 : i32
    %11 = arith.extui %10 : i1 to i32
    %c0_i32_9 = arith.constant 0 : i32
    %12 = arith.cmpi ne, %11, %c0_i32_9 : i32
    scf.if %12 {
      %c0_10 = arith.constant 0 : index
      %c0_11 = arith.constant 0 : index
      %13 = vector.load %arg7[%c0_10, %c0_11] : memref<16x50xf32, #tpu.memory_space<vmem>>, vector<16x50xf32>
      %c0_12 = arith.constant 0 : index
      %c0_13 = arith.constant 0 : index
      %14 = vector.load %arg5[%c0_12, %c0_13] : memref<1x50xf32, #tpu.memory_space<vmem>>, vector<1x50xf32>
      %15 = vector.broadcast %14 : vector<1x50xf32> to vector<16x50xf32>
      %16 = arith.addf %13, %15 : vector<16x50xf32>
      %c0_14 = arith.constant 0 : index
      %c0_15 = arith.constant 0 : index
      %17 = vector.load %arg6[%c0_14, %c0_15] : memref<16x50xf32, #tpu.memory_space<vmem>>, vector<16x50xf32>
      tpu.vector_store %arg6[%c0_14, %c0_15], %16 {strides = array<i32>} : memref<16x50xf32, #tpu.memory_space<vmem>>, vector<16x50xf32>,
    } else {
    }
    return
  }
  func.func @transform_0(%arg0: i32, %arg1: i32, %arg2: i32) -> (i32, i32) {
    %c0_i32 = arith.constant 0 : i32
    return %arg0, %arg2 : i32, i32
  }
  func.func @transform_1(%arg0: i32, %arg1: i32, %arg2: i32) -> (i32, i32) {
    %c0_i32 = arith.constant 0 : i32
    return %arg2, %arg1 : i32, i32
  }
  func.func @transform_2(%arg0: i32, %arg1: i32, %arg2: i32) -> (i32, i32) {
    %c0_i32 = arith.constant 0 : i32
    %c0_i32_0 = arith.constant 0 : i32
    return %c0_i32, %arg1 : i32, i32
  }
  func.func @transform_3(%arg0: i32, %arg1: i32, %arg2: i32) -> (i32, i32) {
    %c0_i32 = arith.constant 0 : i32
    return %arg0, %arg1 : i32, i32
  }
}

</mosaic_0001>

<bundles_post_ra>
// kernel: gpt2_forward.14
= control target key start
LH: loop header
LB: loop body
LE: loop exit
PB: predicated region body
PF: predicated region fallthrough
CT: control target
= control target key end

     0   :  { %vm19_vm0 = vcmask 523264   ;;  %v98_v1 = vmov 0.0   ;;  %vm43_vm1 = vcmask 261120   ;;  %s146_s1 = inlined_call_operand.vmem [shape: bf16[32,64], index: 1, kind: input, shape index: {}]   ;;  %s147_s0 = inlined_call_operand.vmem [shape: f32[16,32], index: 0, kind: input, shape index: {}]   ;;  %s148_s2 = inlined_call_operand.vmem [shape: f32[1,64], index: 2, kind: input, shape index: {}]   ;;  %s149_s3 = inlined_call_operand.vmem [shape: f32[16,64], index: 3, kind: output, shape index: {}]  }
   0x1   :  { %v95_v0 = vld [vmem:[%s146_s1 + $0x8] sm:$0xff]  ;;  %20 = vst.msk [vmem:[#allocation2] sm:$0xff] %vm19_vm0, %v98_v1  ;;  %v94_v2 = vld [vmem:[%s146_s1] sm:$0xff] }
   0x2   :  { %21 = vst.msk [vmem:[#allocation2 + $0x8] sm:$0xff] %vm19_vm0, %v98_v1  ;;  %53 = vmatpush.bf16.msra.mxu0 %v95_v0  ;;  %v22_v3 = vld [vmem:[%s147_s0] sm:$0xff]  ;;  %v23_v4 = vld [vmem:[%s147_s0 + $0x8] sm:$0xff] }
   0x3   :  { %v28_v5 = vpack.c.bf16 %v23_v4, %v22_v3  ;;  %v97_v10 = vld [vmem:[%s148_s2] ss:$0 sm:$0xff] }
   0x6   :  { %54 = vmatpush.bf16.msra.mxu0 %v94_v2 }
   0x8   :  { %v29_v6 = vld [vmem:[#allocation2] sm:$0xff] }
   0x9   :  { %93 = vmatmul.msk.bf16.vlgmr.msra.gmra.mxu0 %vm43_vm1, %v28_v5  ;;  %v30_v9 = vld [vmem:[#allocation2 + $0x8] sm:$0xff] }
  0x86   :  { %v56_v7 = vpop.f32.mrf.mxu0 }
  0x87   :  { %v61_v8 = vadd.f32 %v56_v7, %v29_v6 }
  0x89   :  { %64 = vst.msk [vmem:[#allocation2] sm:$0xff] %vm19_vm0, %v61_v8 }
  0x8e   :  { %v58_v11 = vpop.f32.mrf.mxu0 }
  0x8f   :  { %v62_v12 = vadd.f32 %v58_v11, %v30_v9 }
  0x90   :  { %v69_v13 = vld [vmem:[#allocation2] sm:$0xff] }
  0x91   :  { %v75_v14 = vadd.f32 %v97_v10, %v69_v13  ;;  %65 = vst.msk [vmem:[#allocation2 + $0x8] sm:$0xff] %vm19_vm0, %v62_v12 }
  0x93   :  { %v77_v15 = vmax.f32 %v75_v14, 0.0 }
  0x95   :  { %79 = vst.msk [vmem:[%s149_s3] sm:$0xff] %vm19_vm0, %v77_v15 }
  0x98   :  { %v70_v16 = vld [vmem:[#allocation2 + $0x8] sm:$0xff] }
  0x99   :  { %v76_v17 = vadd.f32 %v97_v10, %v70_v16 }
  0x9b   :  { %v78_v18 = vmax.f32 %v76_v17, 0.0 }
  0x9d   :  { %80 = vst.msk [vmem:[%s149_s3 + $0x8] sm:$0xff] %vm19_vm0, %v78_v18 }

// kernel: gpt2_forward.13
= control target key start
LH: loop header
LB: loop body
LE: loop exit
PB: predicated region body
PF: predicated region fallthrough
CT: control target
= control target key end

     0   :  { %vm28_vm0 = vcmask 261120   ;;  %v180_v1 = vmov 0.0   ;;  %v181_v23 = vmov 32.0   ;;  %s261_s1 = inlined_call_operand.vmem [shape: bf16[32,32], index: 1, kind: input, shape index: {}]   ;;  %s262_s0 = inlined_call_operand.vmem [shape: f32[16,32], index: 0, kind: input, shape index: {}]   ;;  %s263_s2 = inlined_call_operand.vmem [shape: f32[1,32], index: 2, kind: input, shape index: {}]   ;;  %s264_s3 = inlined_call_operand.vmem [shape: f32[16,32], index: 3, kind: input, shape index: {}]   ;;  %s265_s4 = inlined_call_operand.vmem [shape: f32[1,32], index: 4, kind: input, shape index: {}]   ;;  %s266_s5 = inlined_call_operand.vmem [shape: f32[1,32], index: 5, kind: input, shape index: {}]   ;;  %s267_s6 = inlined_call_operand.vmem [shape: f32[16,32], index: 6, kind: output, shape index: {}]  }
   0x1   :  { %v168_v0 = vld [vmem:[%s261_s1 + $0x8] sm:$0xff]  ;;  %29 = vst.msk [vmem:[#allocation2] sm:$0xff] %vm28_vm0, %v180_v1  ;;  %v167_v2 = vld [vmem:[%s261_s1] sm:$0xff]  ;;  %174 = vrcp.f32 %v181_v23 }
   0x2   :  { %30 = vst.msk [vmem:[#allocation2 + $0x8] sm:$0xff] %vm28_vm0, %v180_v1  ;;  %62 = vmatpush.bf16.msra.mxu0 %v168_v0  ;;  %v31_v3 = vld [vmem:[%s262_s0] sm:$0xff]  ;;  %v32_v4 = vld [vmem:[%s262_s0 + $0x8] sm:$0xff] }
   0x3   :  { %v37_v5 = vpack.c.bf16 %v32_v4, %v31_v3  ;;  %v171_v10 = vld [vmem:[%s263_s2] ss:$0 sm:$0xff]  ;;  %v86_v19 = vld [vmem:[%s264_s3 + $0x8] sm:$0xff] }
   0x4   :  { %v85_v14 = vld [vmem:[%s264_s3] sm:$0xff] }
   0x5   :  { %v172_v54 = vld [vmem:[%s265_s4] ss:$0 sm:$0xff] }
   0x6   :  { %63 = vmatpush.bf16.msra.mxu0 %v167_v2  ;;  %v173_v57 = vld [vmem:[%s266_s5] ss:$0 sm:$0xff] }
   0x7   :  { %v175_v24 = vpop.eup %174 }
   0x8   :  { %v38_v6 = vld [vmem:[#allocation2] sm:$0xff]  ;;  %v96_v25 = vmul.f32 32.0, %v175_v24  ;;  %vm100_vm1 = vweird.f32 %v175_v24 }
   0x9   :  { %166 = vmatmul.msk.bf16.vlgmr.msra.gmra.mxu0 %vm28_vm0, %v37_v5  ;;  %v39_v9 = vld [vmem:[#allocation2 + $0x8] sm:$0xff] }
   0xa   :  { %v97_v26 = vsub.f32 1.0, %v96_v25 }
   0xc   :  { %v98_v27 = vmul.f32 %v175_v24, %v97_v26 }
   0xe   :  { %v99_v28 = vadd.f32 %v175_v24, %v98_v27 }
  0x10   :  { %v101_v29 = vsel %vm100_vm1, %v175_v24, %v99_v28 }
  0x86   :  { %v65_v7 = vpop.f32.mrf.mxu0 }
  0x87   :  { %v70_v8 = vadd.f32 %v65_v7, %v38_v6 }
  0x89   :  { %72 = vst.msk [vmem:[#allocation2] sm:$0xff] %vm28_vm0, %v70_v8 }
  0x8e   :  { %v67_v11 = vpop.f32.mrf.mxu0 }
  0x8f   :  { %v71_v12 = vadd.f32 %v67_v11, %v39_v9 }
  0x90   :  { %v77_v13 = vld [vmem:[#allocation2] sm:$0xff] }
  0x91   :  { %73 = vst.msk [vmem:[#allocation2 + $0x8] sm:$0xff] %vm28_vm0, %v71_v12  ;;  %v83_v15 = vadd.f32 %v171_v10, %v77_v13 }
  0x93   :  { %v87_v16 = vadd.f32 %v85_v14, %v83_v15 }
  0x95   :  { %v89_v17 = vsel %vm28_vm0, %v87_v16, 0.0 }
  0x96   :  { %90 = vadd.xlane.f32.xlu0 %v89_v17 }
  0x98   :  { %v78_v18 = vld [vmem:[#allocation2 + $0x8] sm:$0xff] }
  0x99   :  { %v84_v20 = vadd.f32 %v171_v10, %v78_v18 }
  0x9b   :  { %v88_v21 = vadd.f32 %v86_v19, %v84_v20 }
  0x9d   :  { %v92_v22 = vsel %vm28_vm0, %v88_v21, 0.0 }
  0x9e   :  { %93 = vadd.xlane.f32.xlu0 %v92_v22 }
 0x109   :  { %v91_v30 = vpop.xlane.xlu0 %90 }
 0x10a   :  { %v102_v31 = vmul.f32 %v101_v29, %v91_v30 }
 0x10c   :  { %v104_v32 = vsub.f32 %v87_v16, %v102_v31 }
 0x10e   :  { %v106_v33 = vmul.f32 %v104_v32, %v104_v32 }
 0x110   :  { %v108_v34 = vsel %vm28_vm0, %v106_v33, 0.0 }
 0x111   :  { %109 = vadd.xlane.f32.xlu1 %v108_v34  ;;  %v94_v35 = vpop.xlane.xlu0 %93 }
 0x112   :  { %v103_v36 = vmul.f32 %v101_v29, %v94_v35 }
 0x114   :  { %v105_v37 = vsub.f32 %v88_v21, %v103_v36 }
 0x116   :  { %v107_v38 = vmul.f32 %v105_v37, %v105_v37 }
 0x118   :  { %v111_v39 = vsel %vm28_vm0, %v107_v38, 0.0 }
 0x119   :  { %112 = vadd.xlane.f32.xlu1 %v111_v39 }
 0x184   :  { %v110_v40 = vpop.xlane.xlu1 %109 }
 0x185   :  { %v114_v41 = vmul.f32 %v110_v40, %v101_v29 }
 0x187   :  { %v116_v42 = vadd.f32 1e-05, %v114_v41 }
 0x189   :  { %176 = vrsqrt.f32 %v116_v42  ;;  %vm124_vm3 = vweird.f32 %v116_v42 }
 0x18c   :  { %v113_v43 = vpop.xlane.xlu1 %112 }
 0x18d   :  { %v115_v44 = vmul.f32 %v113_v43, %v101_v29 }
 0x18f   :  { %v177_v45 = vpop.eup %176  ;;  %v117_v46 = vadd.f32 1e-05, %v115_v44 }
 0x190   :  { %v119_v47 = vmul.f32 %v177_v45, %v116_v42  ;;  %vm125_vm2 = vweird.f32 %v177_v45 }
 0x191   :  { %178 = vrsqrt.f32 %v117_v46  ;;  %vm126_vm4 = vmor %vm124_vm3, %vm125_vm2  ;;  %vm134_vm6 = vweird.f32 %v117_v46 }
 0x192   :  { %v120_v48 = vmul.f32 %v177_v45, %v119_v47 }
 0x194   :  { %v121_v49 = vmul.f32 0.5, %v120_v48 }
 0x196   :  { %v122_v50 = vsub.f32 1.5, %v121_v49 }
 0x197   :  { %v179_v51 = vpop.eup %178 }
 0x198   :  { %v123_v52 = vmul.f32 %v177_v45, %v122_v50  ;;  %v129_v53 = vmul.f32 %v179_v51, %v117_v46  ;;  %vm135_vm5 = vweird.f32 %v179_v51 }
 0x199   :  { %vm136_vm7 = vmor %vm134_vm6, %vm135_vm5 }
 0x19a   :  { %v127_v55 = vsel %vm126_vm4, %v177_v45, %v123_v52  ;;  %v130_v56 = vmul.f32 %v179_v51, %v129_v53 }
 0x19b   :  { %v138_v58 = vmul.f32 %v127_v55, %v104_v32 }
 0x19c   :  { %v131_v59 = vmul.f32 0.5, %v130_v56 }
 0x19d   :  { %v144_v60 = vmul.f32 %v172_v54, %v138_v58 }
 0x19e   :  { %v132_v61 = vsub.f32 1.5, %v131_v59 }
 0x19f   :  { %v150_v62 = vadd.f32 %v173_v57, %v144_v60 }
 0x1a0   :  { %v133_v63 = vmul.f32 %v179_v51, %v132_v61 }
 0x1a1   :  { %152 = vst.msk [vmem:[%s267_s6] sm:$0xff] %vm28_vm0, %v150_v62 }
 0x1a2   :  { %v137_v0 = vsel %vm136_vm7, %v179_v51, %v133_v63 }
 0x1a3   :  { %v139_v1 = vmul.f32 %v137_v0, %v105_v37 }
 0x1a5   :  { %v145_v2 = vmul.f32 %v172_v54, %v139_v1 }
 0x1a7   :  { %v151_v3 = vadd.f32 %v173_v57, %v145_v2 }
 0x1a9   :  { %153 = vst.msk [vmem:[%s267_s6 + $0x8] sm:$0xff] %vm28_vm0, %v151_v3 }

// kernel: gpt2_forward.11
= control target key start
LH: loop header
LB: loop body
LE: loop exit
PB: predicated region body
PF: predicated region fallthrough
CT: control target
= control target key end

     0   :  { %vm58_vm0 = vcmask 1043456   ;;  %vm45_vm1 = vcmask 64512   ;;  %s203_s1 = inlined_call_operand.vmem [shape: bf16[8,128], index: 1, kind: input, shape index: {}]   ;;  %s204_s0 = inlined_call_operand.vmem [shape: f32[64,8], index: 0, kind: input, shape index: {}]   ;;  %s205_s2 = inlined_call_operand.vmem [shape: f32[64,128], index: 2, kind: output, shape index: {}]  }
   0x1   :  { %v32_v0 = vld [vmem:[%s203_s1] sm:$0xf]  ;;  %v25_v2 = vld [vmem:[%s204_s0 + $0x8] sm:$0xff]  ;;  %v26_v5 = vld [vmem:[%s204_s0 + $0x10] sm:$0xff] }
   0x2   :  { %v24_v1 = vld [vmem:[%s204_s0] sm:$0xff]  ;;  %v60_v3 = vsel %vm58_vm0, %v32_v0, 0  ;;  %v27_v6 = vld [vmem:[%s204_s0 + $0x18] sm:$0xff]  ;;  %v29_v9 = vld [vmem:[%s204_s0 + $0x28] sm:$0xff] }
   0x3   :  { %v33_v4 = vpack.c.bf16 %v25_v2, %v24_v1  ;;  %v28_v7 = vld [vmem:[%s204_s0 + $0x20] sm:$0xff]  ;;  %69 = vmatpush.bf16.msra.mxu0 %v60_v3  ;;  %134 = vmatpush.bf16.msra.mxu1 %v60_v3  ;;  %v34_v8 = vpack.c.bf16 %v27_v6, %v26_v5  ;;  %v30_v10 = vld [vmem:[%s204_s0 + $0x30] sm:$0xff]  ;;  %v31_v11 = vld [vmem:[%s204_s0 + $0x38] sm:$0xff] }
   0x4   :  { %135 = vmatpush.bf16.msra.mxu2 %v60_v3  ;;  %136 = vmatpush.bf16.msra.mxu3 %v60_v3  ;;  %v35_v12 = vpack.c.bf16 %v29_v9, %v28_v7  ;;  %v36_v13 = vpack.c.bf16 %v31_v11, %v30_v10 }
   0x6   :  { %130 = vmatmul.msk.bf16.vlgmr.msra.gmra.mxu0 %vm45_vm1, %v33_v4  ;;  %131 = vmatmul.msk.bf16.vlgmr.msra.gmra.mxu1 %vm45_vm1, %v34_v8 }
   0x7   :  { %132 = vmatmul.msk.bf16.vlgmr.msra.gmra.mxu2 %vm45_vm1, %v35_v12  ;;  %133 = vmatmul.msk.bf16.vlgmr.msra.gmra.mxu3 %vm45_vm1, %v36_v13 }
  0x83   :  { %v71_v14 = vpop.f32.mrf.mxu0  ;;  %v76_v15 = vpop.f32.mrf.mxu1 }
  0x84   :  { %118 = vst [vmem:[%s205_s2] sm:$0xff] %v71_v14 }
  0x85   :  { %120 = vst [vmem:[%s205_s2 + $0x10] sm:$0xff] %v76_v15 }
  0x8a   :  { %v81_v16 = vpop.f32.mrf.mxu2  ;;  %v86_v17 = vpop.f32.mrf.mxu3 }
  0x8b   :  { %122 = vst [vmem:[%s205_s2 + $0x20] sm:$0xff] %v81_v16  ;;  %v73_v18 = vpop.f32.mrf.mxu0  ;;  %v78_v19 = vpop.f32.mrf.mxu1 }
  0x8c   :  { %124 = vst [vmem:[%s205_s2 + $0x30] sm:$0xff] %v86_v17 }
  0x8d   :  { %119 = vst [vmem:[%s205_s2 + $0x8] sm:$0xff] %v73_v18 }
  0x8e   :  { %121 = vst [vmem:[%s205_s2 + $0x18] sm:$0xff] %v78_v19 }
  0x92   :  { %v83_v20 = vpop.f32.mrf.mxu2  ;;  %v88_v21 = vpop.f32.mrf.mxu3 }
  0x93   :  { %123 = vst [vmem:[%s205_s2 + $0x28] sm:$0xff] %v83_v20 }
  0x94   :  { %125 = vst [vmem:[%s205_s2 + $0x38] sm:$0xff] %v88_v21 }

// kernel: gpt2_forward.12
= control target key start
LH: loop header
LB: loop body
LE: loop exit
PB: predicated region body
PF: predicated region fallthrough
CT: control target
= control target key end

     0   :  { %s789_s12 = smov 0   ;;  %s791_s13 = smov 0   ;;  %s900_s0 = inlined_call_operand.vmem [shape: f32[2,8,32], index: 0, kind: input, shape index: {}]   ;;  %s901_s1 = inlined_call_operand.vmem [shape: f32[2,8,32], index: 1, kind: input, shape index: {}]   ;;  %s902_s2 = inlined_call_operand.vmem [shape: f32[2,8,32], index: 2, kind: input, shape index: {}]   ;;  %s903_s3 = inlined_call_operand.vmem [shape: f32[2,8,32], index: 3, kind: output, shape index: {}]  }
   0x1   :  { %s793_s14 = smov 0  }
   0x2 LB: > { %s25_s15 = sadd.s32 1, %s757_s13  ;;  %p678_p0 = scmp.ge.s32.totalorder %s761_s14, 1  ;;  %s761_s14 = sphi %s793_s14, %s13_s14   ;;  %s757_s13 = sphi %s791_s13, %s905_s13   ;;  %s753_s12 = sphi %s789_s12, %s904_s12  }
   0x3   : > { %p27_p1 = scmp.ge.s32.totalorder %s25_s15, 2  ;;  %p183_p2 = scmp.lt.s32.totalorder %s761_s14, 3 }
   0x5   : > { %s907_s15 = smov (%p27_p1, %s25_s15), 0  ;;  %p184_p3 = pnand %p678_p0, %p183_p2 }
   0x6   : > { %p225_p4 = scmp.lt.s32.totalorder (!%p184_p3), %s753_s12, 1  ;;  %s763_s23 = smov (!%p184_p3), 120  }
   0x7   : > { %187 = sbr.rel (%p184_p3) target bundleno = 1084 (0x43c), region = 32  ;;  %s764_s24 = smov (!%p184_p3), 112  }
   0x8   : > { %s765_s25 = smov (!%p184_p3), 104   ;;  %s766_s5 = smov (!%p184_p3), 24  }
   0x9   : > { %s767_s6 = smov (!%p184_p3), 8   ;;  %s768_s7 = smov (!%p184_p3), 16  }
   0xc   : > { %s909_s12 = smov (!%p225_p4, %s753_s12), 1  ;;  %vm266_vm0 = vcmask 64512   ;;  %v261_v12 = vlaneseq  ;;  %vm315_vm2 = vcmask 1043456  }
   0xd   : > { %s807_s16 = sshll.u32 %s909_s12, 3 }
   0xe   : > { %s238_s19 = scalar_lea.vmem %s901_s1, %s807_s16  ;;  %s231_s22 = scalar_lea.vmem %s900_s0, %s807_s16  ;;  %v825_v14 = vshrl.u32 %v261_v12, 7  ;;  %v827_v15 = vand.u32 127, %v261_v12 }
   0xf   : > { %v257_v0 = vld [vmem:[%s238_s19] sm:$0xff]  ;;  %s245_s28 = scalar_lea.vmem %s902_s2, %s807_s16  ;;  %s865_s4 = scalar_lea.vmem %s903_s3, %s807_s16 }
  0x10   : > { %v254_v1 = vld [vmem:[%s231_s22] sm:$0xff]  ;;  %v258_v2 = vpack.c.bf16 %v257_v0, %v257_v0  ;;  %vm265_vm1 = vcmp.ge.s32.totalorder %v825_v14, %v827_v15 }
  0x11   : > { %v255_v3 = vmul.f32 0.17677669, %v254_v1  ;;  %v259_v33 = vld [vmem:[%s245_s28] sm:$0xff] }
  0x12   : > { %v271_v4 = vsel %vm266_vm0, %v258_v2, 0  ;;  %v339_v5 = vunpack.c.l.b16 %v258_v2  ;;  %v260_v34 = vpack.c.bf16 %v259_v33, %v259_v33 }
  0x13   : > { %280 = vmatpush.bf16.xpose.msra.mxu0 %v271_v4  ;;  %v256_v6 = vpack.c.bf16 %v255_v3, %v255_v3 }
  0x14   : > { %v340_v7 = vpack.c.b16 %v339_v5, %v339_v5  ;;  %v317_v36 = vsel %vm315_vm2, %v260_v34, 0  ;;  %v389_v60 = vunpack.c.l.b16 %v260_v34 }
  0x15   : > { %v334_v8 = vunpack.c.l.b16 %v256_v6  ;;  %326 = vmatpush.bf16.msra.mxu1 %v317_v36 }
  0x16   : > { %341 = vrot.lane.b32.xlu1 %v340_v7, %s763_s23  ;;  %420 = vrot.lane.b32.xlu2 %v340_v7, %s764_s24  ;;  %v390_v61 = vpack.c.b16 %v389_v60, %v389_v60 }
  0x17   : > { %v335_v9 = vpack.c.b16 %v334_v8, %v334_v8 }
  0x1a   : > { %683 = vmatmul.msk.bf16.vlgmr.msra.gmra.mxu0 %vm266_vm0, %v256_v6 }
  0x1e   : > { %336 = vrot.lane.b32.xlu1 %v335_v9, %s763_s23  ;;  %496 = vrot.lane.b32.xlu2 %v340_v7, %s765_s25 }
  0x26   : > { %494 = vrot.lane.b32.xlu1 %v335_v9, %s765_s25 }
  0x70   : > { %v421_v20 = vpop.permute.xlu2 %420 }
  0x71   : > { %v426_v35 = vsel %vm266_vm0, %v421_v20, 0 }
  0x72   : > { %435 = vmatpush.bf16.xpose.msrb.mxu1 %v426_v35 }
  0x78   : > { %v497_v21 = vpop.permute.xlu2 %496 }
  0x79   : > { %v502_v22 = vsel %vm266_vm0, %v497_v21, 0 }
  0x7a   : > { %511 = vmatpush.bf16.xpose.msrb.mxu0 %v502_v22 }
  0x88   : > { %v342_v10 = vpop.permute.xlu1 %341 }
  0x89   : > { %v347_v11 = vsel %vm266_vm0, %v342_v10, 0 }
  0x8a   : > { %356 = vmatpush.bf16.xpose.msra.mxu2 %v347_v11 }
  0x90   : > { %v337_v13 = vpop.permute.xlu1 %336 }
  0x91   : > { %685 = vmatmul.msk.bf16.vlgmr.msra.gmra.mxu2 %vm266_vm0, %v337_v13 }
  0x97   : > { %v282_v16 = vpop.f32.mrf.mxu0 }
  0x98   : > { %v286_v17 = vsel %vm265_vm1, %v282_v16, -1e+20  ;;  %v495_v23 = vpop.permute.xlu1 %494 }
  0x99   : > { %v287_v18 = vsel %vm266_vm0, %v286_v17, -inf  ;;  %689 = vmatmul.msk.bf16.vlgmr.msrb.gmra.mxu0 %vm266_vm0, %v495_v23 }
  0x9a   : > { %288 = vmax.xlane.f32.xlu0 %v287_v18 }
  0x9f   : > { %v284_v19 = vpop.f32.mrf.mxu0 }
 0x10d   : > { %v289_v24 = vpop.xlane.xlu0 %288 }
 0x10e   : > { %v290_v25 = vsub.f32 %v286_v17, %v289_v24 }
 0x110   : > { %v291_v26 = vmul.f32 1.442695, %v290_v25 }
 0x112   : > { %723 = vpow2.f32 %v291_v26 }
 0x114   : > { %v358_v27 = vpop.f32.mrf.mxu2 }
 0x115   : > { %v362_v28 = vsel %vm265_vm1, %v358_v27, -1e+20 }
 0x116   : > { %v363_v29 = vsel %vm266_vm0, %v362_v28, -inf  ;;  %v513_v37 = vpop.f32.mrf.mxu0 }
 0x117   : > { %364 = vmax.xlane.f32.xlu2 %v363_v29  ;;  %v517_v38 = vsel %vm265_vm1, %v513_v37, -1e+20 }
 0x118   : > { %v724_v30 = vpop.eup %723  ;;  %v518_v40 = vsel %vm266_vm0, %v517_v38, -inf }
 0x119   : > { %v293_v31 = vsel %vm266_vm0, %v724_v30, 0.0 }
 0x11a   : > { %294 = vadd.xlane.f32.xlu0 %v293_v31 }
 0x11c   : > { %v360_v32 = vpop.f32.mrf.mxu2 }
 0x11e   : > { %v515_v44 = vpop.f32.mrf.mxu0 }
 0x12e   : > { %418 = vrot.lane.b32.xlu0 %v335_v9, %s764_s24 }
 0x158   : > { %519 = vmax.xlane.f32.xlu0 %v518_v40 }
 0x16c   : > { %543 = vrot.lane.b32.xlu0 %v390_v61, %s765_s25 }
 0x18a   : > { %v365_v39 = vpop.xlane.xlu2 %364 }
 0x18b   : > { %v366_v41 = vsub.f32 %v362_v28, %v365_v39 }
 0x18d   : > { %v295_v42 = vpop.xlane.xlu0 %294  ;;  %v367_v43 = vmul.f32 1.442695, %v366_v41 }
 0x18e   : > { %725 = vrcp.f32 %v295_v42  ;;  %v307_v50 = vand.u32 2147483648, %v295_v42  ;;  %v305_v52 = vand.u32 2147483647, %v295_v42  ;;  %vm301_vm4 = vweird.f32 %v295_v42 }
 0x18f   : > { %727 = vpow2.f32 %v367_v43 }
 0x190   : > { %v308_v54 = vor.u32 1.1754944e-38, %v307_v50  ;;  %vm306_vm6 = vcmp.eq.f32.partialorder %v305_v52, 8.507059e+37 }
 0x194   : > { %v726_v45 = vpop.eup %725 }
 0x195   : > { %v854_v46 = vpop.eup %727  ;;  %v297_v47 = vmul.f32 %v726_v45, %v295_v42  ;;  %vm302_vm3 = vweird.f32 %v726_v45 }
 0x196   : > { %v369_v48 = vsel %vm266_vm0, %v854_v46, 0.0  ;;  %vm303_vm5 = vmor %vm301_vm4, %vm302_vm3 }
 0x197   : > { %v298_v49 = vsub.f32 1.0, %v297_v47  ;;  %370 = vadd.xlane.f32.xlu2 %v369_v48 }
 0x199   : > { %v299_v51 = vmul.f32 %v726_v45, %v298_v49 }
 0x19b   : > { %v300_v53 = vadd.f32 %v726_v45, %v299_v51 }
 0x19d   : > { %v304_v55 = vsel %vm303_vm5, %v726_v45, %v300_v53  ;;  %vm492_vm5 = vcmask 195712  }
 0x19e   : > { %v309_v56 = vsel %vm306_vm6, %v308_v54, %v304_v55  ;;  %vm568_vm6 = vcmask 261312  }
 0x19f   : > { %v310_v57 = vmul.f32 %v724_v30, %v309_v56 }
 0x1a0   : > { %v419_v59 = vpop.permute.xlu0 %418 }
 0x1a1   : > { %v311_v58 = vpack.c.bf16 %v310_v57, %v310_v57 }
 0x1a3   : > { %684 = vmatmul.msk.bf16.vlgmr.msra.gmra.mxu1 %vm266_vm0, %v311_v58 }
 0x1b3   : > { %687 = vmatmul.msk.bf16.vlgmr.msrb.gmra.mxu1 %vm266_vm0, %v419_v59 }
 0x1cb   : > { %v520_v63 = vpop.xlane.xlu0 %519 }
 0x1cc   : > { %v521_v0 = vsub.f32 %v517_v38, %v520_v63 }
 0x1ce   : > { %v522_v2 = vmul.f32 1.442695, %v521_v0 }
 0x1d0   : > { %729 = vpow2.f32 %v522_v2 }
 0x1d6   : > { %v730_v6 = vpop.eup %729 }
 0x1d7   : > { %v524_v8 = vsel %vm266_vm0, %v730_v6, 0.0 }
 0x1de   : > { %v544_v9 = vpop.permute.xlu0 %543 }
 0x1df   : > { %v549_v10 = vsel %vm315_vm2, %v544_v9, 0 }
 0x1e0   : > { %558 = vmatpush.bf16.msrb.mxu2 %v549_v10 }
 0x20a   : > { %v371_v29 = vpop.xlane.xlu2 %370 }
 0x20b   : > { %vm377_vm11 = vweird.f32 %v371_v29  ;;  %v383_v34 = vand.u32 2147483648, %v371_v29  ;;  %v381_v36 = vand.u32 2147483647, %v371_v29 }
 0x20d   : > { %v384_v37 = vor.u32 1.1754944e-38, %v383_v34  ;;  %vm382_vm14 = vcmp.eq.f32.partialorder %v381_v36, 8.507059e+37 }
 0x220   : > { %v328_v62 = vpop.f32.mrf.mxu1 }
 0x221   : > { %332 = vst.msk [vmem:[%s865_s4] sm:$0xff] %vm266_vm0, %v328_v62 }
 0x228   : > { %v330_v1 = vpop.f32.mrf.mxu1 }
 0x230   : > { %v437_v3 = vpop.f32.mrf.mxu1 }
 0x231   : > { %v441_v4 = vsel %vm265_vm1, %v437_v3, -1e+20 }
 0x232   : > { %v442_v5 = vsel %vm266_vm0, %v441_v4, -inf }
 0x233   : > { %443 = vmax.xlane.f32.xlu1 %v442_v5 }
 0x238   : > { %v439_v7 = vpop.f32.mrf.mxu1 }
 0x23b   : > { %525 = vadd.xlane.f32.xlu1 %v524_v8 }
 0x254   : > { %467 = vrot.lane.b32.xlu1 %v390_v61, %s764_s24 }
 0x2a6   : > { %v444_v11 = vpop.xlane.xlu1 %443 }
 0x2a7   : > { %v445_v12 = vsub.f32 %v441_v4, %v444_v11 }
 0x2a9   : > { %v446_v13 = vmul.f32 1.442695, %v445_v12 }
 0x2ab   : > { %731 = vpow2.f32 %v446_v13 }
 0x2ae   : > { %v526_v14 = vpop.xlane.xlu1 %525 }
 0x2af   : > { %733 = vrcp.f32 %v526_v14  ;;  %v538_v20 = vand.u32 2147483648, %v526_v14  ;;  %v536_v22 = vand.u32 2147483647, %v526_v14  ;;  %vm532_vm8 = vweird.f32 %v526_v14 }
 0x2b0   : > { %735 = vrcp.f32 %v371_v29 }
 0x2b1   : > { %v876_v15 = vpop.eup %731  ;;  %v539_v24 = vor.u32 1.1754944e-38, %v538_v20  ;;  %vm537_vm10 = vcmp.eq.f32.partialorder %v536_v22, 8.507059e+37 }
 0x2b2   : > { %v448_v16 = vsel %vm266_vm0, %v876_v15, 0.0 }
 0x2b3   : > { %449 = vadd.xlane.f32.xlu2 %v448_v16 }
 0x2b5   : > { %v734_v17 = vpop.eup %733 }
 0x2b6   : > { %v528_v18 = vmul.f32 %v734_v17, %v526_v14  ;;  %vm533_vm7 = vweird.f32 %v734_v17  ;;  %v736_v30 = vpop.eup %735 }
 0x2b7   : > { %vm534_vm9 = vmor %vm532_vm8, %vm533_vm7  ;;  %v373_v31 = vmul.f32 %v736_v30, %v371_v29  ;;  %vm378_vm12 = vweird.f32 %v736_v30 }
 0x2b8   : > { %v529_v19 = vsub.f32 1.0, %v528_v18  ;;  %vm379_vm13 = vmor %vm377_vm11, %vm378_vm12 }
 0x2b9   : > { %v374_v32 = vsub.f32 1.0, %v373_v31 }
 0x2ba   : > { %v530_v21 = vmul.f32 %v734_v17, %v529_v19 }
 0x2bb   : > { %v375_v33 = vmul.f32 %v736_v30, %v374_v32 }
 0x2bc   : > { %v531_v23 = vadd.f32 %v734_v17, %v530_v21 }
 0x2bd   : > { %v376_v35 = vadd.f32 %v736_v30, %v375_v33 }
 0x2be   : > { %v535_v25 = vsel %vm534_vm9, %v734_v17, %v531_v23 }
 0x2bf   : > { %v540_v26 = vsel %vm537_vm10, %v539_v24, %v535_v25  ;;  %v380_v39 = vsel %vm379_vm13, %v736_v30, %v376_v35 }
 0x2c0   : > { %v541_v27 = vmul.f32 %v730_v6, %v540_v26  ;;  %v385_v40 = vsel %vm382_vm14, %v384_v37, %v380_v39 }
 0x2c1   : > { %v386_v43 = vmul.f32 %v854_v46, %v385_v40 }
 0x2c2   : > { %v542_v28 = vpack.c.bf16 %v541_v27, %v541_v27 }
 0x2c3   : > { %v387_v50 = vpack.c.bf16 %v386_v43, %v386_v43 }
 0x2c4   : > { %690 = vmatmul.msk.bf16.vlgmr.msrb.gmra.mxu2 %vm266_vm0, %v542_v28 }
 0x2c6   : > { %v468_v41 = vpop.permute.xlu1 %467 }
 0x2c7   : > { %v473_v47 = vsel %vm315_vm2, %v468_v41, 0 }
 0x2cb   : > { %391 = vrot.lane.b32.xlu2 %v390_v61, %s763_s23 }
 0x326   : > { %v450_v38 = vpop.xlane.xlu2 %449 }
 0x327   : > { %737 = vrcp.f32 %v450_v38  ;;  %v462_v53 = vand.u32 2147483648, %v450_v38  ;;  %vm456_vm1 = vweird.f32 %v450_v38  ;;  %v460_v54 = vand.u32 2147483647, %v450_v38 }
 0x329   : > { %v463_v55 = vor.u32 1.1754944e-38, %v462_v53  ;;  %vm461_vm4 = vcmp.eq.f32.partialorder %v460_v54, 8.507059e+37 }
 0x32d   : > { %v738_v42 = vpop.eup %737 }
 0x32e   : > { %v452_v44 = vmul.f32 %v738_v42, %v450_v38  ;;  %v392_v45 = vpop.permute.xlu2 %391  ;;  %vm457_vm15 = vweird.f32 %v738_v42 }
 0x32f   : > { %v397_v48 = vsel %vm315_vm2, %v392_v45, 0  ;;  %vm458_vm3 = vmor %vm456_vm1, %vm457_vm15  ;;  %vm416_vm2 = vcmask 130112  }
 0x330   : > { %v453_v49 = vsub.f32 1.0, %v452_v44  ;;  %406 = vmatpush.bf16.msra.mxu3 %v397_v48 }
 0x332   : > { %v454_v51 = vmul.f32 %v738_v42, %v453_v49 }
 0x333   : > { %686 = vmatmul.msk.bf16.vlgmr.msra.gmra.mxu3 %vm266_vm0, %v387_v50 }
 0x334   : > { %482 = vmatpush.bf16.msrb.mxu3 %v473_v47  ;;  %v455_v52 = vadd.f32 %v738_v42, %v454_v51 }
 0x336   : > { %v459_v46 = vsel %vm458_vm3, %v738_v42, %v455_v52 }
 0x337   : > { %v464_v56 = vsel %vm461_vm4, %v463_v55, %v459_v46 }
 0x338   : > { %v465_v57 = vmul.f32 %v876_v15, %v464_v56 }
 0x33a   : > { %v466_v58 = vpack.c.bf16 %v465_v57, %v465_v57 }
 0x343   : > { %688 = vmatmul.msk.bf16.vlgmr.msrb.gmra.mxu3 %vm266_vm0, %v466_v58 }
 0x347   : > { %v560_v59 = vpop.f32.mrf.mxu2 }
 0x348   : > { %565 = vrot.lane.b32.xlu1 %v560_v59, %s766_s5 }
 0x34f   : > { %v562_v60 = vpop.f32.mrf.mxu2 }
 0x3b6   : > { %v408_v61 = vpop.f32.mrf.mxu3 }
 0x3b7   : > { %413 = vrot.lane.b32.xlu2 %v408_v61, %s767_s6 }
 0x3ba   : > { %v566_v3 = vpop.permute.xlu1 %565 }
 0x3be   : > { %v410_v62 = vpop.f32.mrf.mxu3 }
 0x3c6   : > { %v484_v63 = vpop.f32.mrf.mxu3 }
 0x3c7   : > { %489 = vrot.lane.b32.xlu0 %v484_v63, %s768_s7 }
 0x3ce   : > { %v486_v0 = vpop.f32.mrf.mxu3 }
 0x411   : > { %v414_v1 = vpop.permute.xlu2 %413 }
 0x412   : > { %417 = vst.msk [vmem:[%s865_s4] sm:$0xff] %vm416_vm2, %v414_v1 }
 0x439   : > { %v490_v2 = vpop.permute.xlu0 %489 }
 0x43a   : > { %493 = vst.msk [vmem:[%s865_s4] sm:$0xff] %vm492_vm5, %v490_v2 }
 0x43b   : > { %569 = vst.msk [vmem:[%s865_s4] sm:$0xff] %vm568_vm6, %v566_v3 }
 0x43c PF: > { %s13_s14 = sadd.s32 1, %s761_s14   ;;  %s904_s12 = smov %s757_s13 }
 0x43d   : > { %p10_p5 = scmp.ge.s32.totalorder %s13_s14, 4   ;;  %s905_s13 = smov %s907_s15 }
 0x43f   :  { %12 = sbr.rel (!%p10_p5) target bundleno = 2 (0x2), region = 68 }

// kernel: gpt2_forward.21
= control target key start
LH: loop header
LB: loop body
LE: loop exit
PB: predicated region body
PF: predicated region fallthrough
CT: control target
= control target key end

     0   :  { %vm20_vm0 = vcmask 408576   ;;  %v140_v1 = vmov 0.0   ;;  %s188_s0 = inlined_call_operand.vmem [shape: f32[16,32], index: 0, kind: input, shape index: {}]   ;;  %s189_s1 = inlined_call_operand.vmem [shape: bf16[32,50], index: 1, kind: input, shape index: {}]   ;;  %s190_s2 = inlined_call_operand.vmem [shape: f32[1,50], index: 2, kind: input, shape index: {}]   ;;  %s191_s3 = inlined_call_operand.hbm [shape: f32[16,50], index: 3, kind: output, shape index: {}]  }
   0x1   :  { %v108_v0 = vld [vmem:[%s189_s1 + $0x8] sm:$0xff]  ;;  %21 = vst.msk [vmem:[#allocation2] sm:$0xff] %vm20_vm0, %v140_v1 }
   0x2   :  { %8 = vsyncpa [#allocation4], 0  ;;  %54 = vmatpush.bf16.msra.mxu0 %v108_v0  ;;  %v107_v2 = vld [vmem:[%s189_s1] sm:$0xff]  ;;  %v24_v4 = vld [vmem:[%s188_s0 + $0x8] sm:$0xff]  ;;  %22 = vst.msk [vmem:[#allocation2 + $0x8] sm:$0xff] %vm20_vm0, %v140_v1  ;;  %vm44_vm1 = vcmask 261120  }
   0x3   :  { %v23_v3 = vld [vmem:[%s188_s0] sm:$0xff]  ;;  %s141_s0 = smov [#allocation3]   ;;  %s86_s24 = sshll.u32 %s191_s3, 4  ;;  %s87_s24 = int_to_ptr.hbm [resolvable:$true] %s86_s24 }
   0x4   :  { %v29_v5 = vpack.c.bf16 %v24_v4, %v23_v3  ;;  %v113_v10 = vld [vmem:[%s190_s2] ss:$0 sm:$0xff]  ;;  %s84_s21 = sshll.u32 %s141_s0, 4  ;;  %s142_s2 = smov 128   ;;  %s85_s21 = int_to_ptr.vmem [resolvable:$true] %s84_s21 }
   0x5   :  { %s143_s25 = smov 8  }
   0x6   :  { %55 = vmatpush.bf16.msra.mxu0 %v107_v2 }
   0x8   :  { %v30_v6 = vld [vmem:[#allocation2] sm:$0xff] }
   0x9   :  { %106 = vmatmul.msk.bf16.vlgmr.msra.gmra.mxu0 %vm44_vm1, %v29_v5  ;;  %v31_v9 = vld [vmem:[#allocation2 + $0x8] sm:$0xff] }
  0x86   :  { %v57_v7 = vpop.f32.mrf.mxu0 }
  0x87   :  { %v62_v8 = vadd.f32 %v57_v7, %v30_v6 }
  0x89   :  { %65 = vst.msk [vmem:[#allocation2] sm:$0xff] %vm20_vm0, %v62_v8 }
  0x8e   :  { %v59_v11 = vpop.f32.mrf.mxu0 }
  0x8f   :  { %v63_v12 = vadd.f32 %v59_v11, %v31_v9 }
  0x90   :  { %v70_v13 = vld [vmem:[#allocation2] sm:$0xff] }
  0x91   :  { %66 = vst.msk [vmem:[#allocation2 + $0x8] sm:$0xff] %vm20_vm0, %v63_v12  ;;  %v76_v14 = vadd.f32 %v113_v10, %v70_v13 }
  0x93   :  { %78 = vst.msk [vmem:[#allocation3] sm:$0xff] %vm20_vm0, %v76_v14 }
  0x98   :  { %v71_v15 = vld [vmem:[#allocation2 + $0x8] sm:$0xff] }
  0x99   :  { %v77_v16 = vadd.f32 %v113_v10, %v71_v15 }
  0x9b   :  { %79 = vst.msk [vmem:[#allocation3 + $0x8] sm:$0xff] %vm20_vm0, %v77_v16 }
  0x9c   :  { %92 = dma.vmem_to_hbm [thread:$0]  %s85_s21, 256, %s87_s24, [#allocation4], %s142_s2, %s142_s2, %s143_s25  }
  0x9d   :  { %138 = dma.done.wait [#allocation4], 256  }
  0x9e   :  { %139 = vsyncadd [#allocation4], 4294967040 }
  0x9f   :  { %97 = vsyncpa [#allocation4], 1 }

// kernel: gpt2_forward.15
= control target key start
LH: loop header
LB: loop body
LE: loop exit
PB: predicated region body
PF: predicated region fallthrough
CT: control target
= control target key end

     0   :  { %vm28_vm0 = vcmask 261120   ;;  %v207_v1 = vmov 0.0   ;;  %vm68_vm1 = vcmask 523264   ;;  %v208_v25 = vmov 32.0   ;;  %s293_s1 = inlined_call_operand.vmem [shape: bf16[64,32], index: 1, kind: input, shape index: {}]   ;;  %s294_s0 = inlined_call_operand.vmem [shape: f32[16,64], index: 0, kind: input, shape index: {}]   ;;  %s295_s2 = inlined_call_operand.vmem [shape: f32[1,32], index: 2, kind: input, shape index: {}]   ;;  %s296_s3 = inlined_call_operand.vmem [shape: f32[16,32], index: 3, kind: input, shape index: {}]   ;;  %s297_s4 = inlined_call_operand.vmem [shape: f32[1,32], index: 4, kind: input, shape index: {}]   ;;  %s298_s5 = inlined_call_operand.vmem [shape: f32[1,32], index: 5, kind: input, shape index: {}]   ;;  %s299_s6 = inlined_call_operand.vmem [shape: f32[16,32], index: 6, kind: output, shape index: {}]  }
   0x1   :  { %v195_v0 = vld [vmem:[%s293_s1 + $0x18] sm:$0xff]  ;;  %29 = vst.msk [vmem:[#allocation2] sm:$0xff] %vm28_vm0, %v207_v1  ;;  %v194_v2 = vld [vmem:[%s293_s1 + $0x10] sm:$0xff]  ;;  %v193_v3 = vld [vmem:[%s293_s1 + $0x8] sm:$0xff]  ;;  %201 = vrcp.f32 %v208_v25 }
   0x2   :  { %30 = vst.msk [vmem:[#allocation2 + $0x8] sm:$0xff] %vm28_vm0, %v207_v1  ;;  %76 = vmatpush.bf16.msra.mxu0 %v195_v0  ;;  %v192_v4 = vld [vmem:[%s293_s1] sm:$0xff]  ;;  %v32_v6 = vld [vmem:[%s294_s0 + $0x8] sm:$0xff] }
   0x3   :  { %v31_v5 = vld [vmem:[%s294_s0] sm:$0xff]  ;;  %v103_v21 = vld [vmem:[%s296_s3 + $0x8] sm:$0xff] }
   0x4   :  { %v41_v7 = vpack.c.bf16 %v32_v6, %v31_v5  ;;  %v198_v12 = vld [vmem:[%s295_s2] ss:$0 sm:$0xff] }
   0x5   :  { %v102_v16 = vld [vmem:[%s296_s3] sm:$0xff] }
   0x6   :  { %77 = vmatpush.bf16.msra.mxu0 %v194_v2  ;;  %v199_v56 = vld [vmem:[%s297_s4] ss:$0 sm:$0xff] }
   0x7   :  { %v202_v26 = vpop.eup %201  ;;  %v200_v59 = vld [vmem:[%s298_s5] ss:$0 sm:$0xff] }
   0x8   :  { %v42_v8 = vld [vmem:[#allocation2] sm:$0xff]  ;;  %v113_v27 = vmul.f32 32.0, %v202_v26  ;;  %vm117_vm2 = vweird.f32 %v202_v26 }
   0x9   :  { %v43_v11 = vld [vmem:[#allocation2 + $0x8] sm:$0xff] }
   0xa   :  { %78 = vmatpush.bf16.msra.mxu0 %v193_v3  ;;  %v114_v28 = vsub.f32 1.0, %v113_v27 }
   0xc   :  { %v115_v29 = vmul.f32 %v202_v26, %v114_v28 }
   0xe   :  { %79 = vmatpush.bf16.msra.mxu0 %v192_v4  ;;  %v116_v30 = vadd.f32 %v202_v26, %v115_v29 }
  0x10   :  { %v118_v31 = vsel %vm117_vm2, %v202_v26, %v116_v30 }
  0x11   :  { %191 = vmatmul.msk.bf16.vlgmr.msra.gmra.mxu0 %vm68_vm1, %v41_v7 }
  0x8e   :  { %v81_v9 = vpop.f32.mrf.mxu0 }
  0x8f   :  { %v86_v10 = vadd.f32 %v81_v9, %v42_v8 }
  0x91   :  { %89 = vst.msk [vmem:[#allocation2] sm:$0xff] %vm28_vm0, %v86_v10 }
  0x96   :  { %v83_v13 = vpop.f32.mrf.mxu0 }
  0x97   :  { %v87_v14 = vadd.f32 %v83_v13, %v43_v11 }
  0x98   :  { %v94_v15 = vld [vmem:[#allocation2] sm:$0xff] }
  0x99   :  { %90 = vst.msk [vmem:[#allocation2 + $0x8] sm:$0xff] %vm28_vm0, %v87_v14  ;;  %v100_v17 = vadd.f32 %v198_v12, %v94_v15 }
  0x9b   :  { %v104_v18 = vadd.f32 %v102_v16, %v100_v17 }
  0x9d   :  { %v106_v19 = vsel %vm28_vm0, %v104_v18, 0.0 }
  0x9e   :  { %107 = vadd.xlane.f32.xlu0 %v106_v19 }
  0xa0   :  { %v95_v20 = vld [vmem:[#allocation2 + $0x8] sm:$0xff] }
  0xa1   :  { %v101_v22 = vadd.f32 %v198_v12, %v95_v20 }
  0xa3   :  { %v105_v23 = vadd.f32 %v103_v21, %v101_v22 }
  0xa5   :  { %v109_v24 = vsel %vm28_vm0, %v105_v23, 0.0 }
  0xa6   :  { %110 = vadd.xlane.f32.xlu0 %v109_v24 }
 0x111   :  { %v108_v32 = vpop.xlane.xlu0 %107 }
 0x112   :  { %v119_v33 = vmul.f32 %v118_v31, %v108_v32 }
 0x114   :  { %v121_v34 = vsub.f32 %v104_v18, %v119_v33 }
 0x116   :  { %v123_v35 = vmul.f32 %v121_v34, %v121_v34 }
 0x118   :  { %v125_v36 = vsel %vm28_vm0, %v123_v35, 0.0 }
 0x119   :  { %126 = vadd.xlane.f32.xlu1 %v125_v36  ;;  %v111_v37 = vpop.xlane.xlu0 %110 }
 0x11a   :  { %v120_v38 = vmul.f32 %v118_v31, %v111_v37 }
 0x11c   :  { %v122_v39 = vsub.f32 %v105_v23, %v120_v38 }
 0x11e   :  { %v124_v40 = vmul.f32 %v122_v39, %v122_v39 }
 0x120   :  { %v128_v41 = vsel %vm28_vm0, %v124_v40, 0.0 }
 0x121   :  { %129 = vadd.xlane.f32.xlu1 %v128_v41 }
 0x18c   :  { %v127_v42 = vpop.xlane.xlu1 %126 }
 0x18d   :  { %v131_v43 = vmul.f32 %v127_v42, %v118_v31 }
 0x18f   :  { %v133_v44 = vadd.f32 1e-05, %v131_v43 }
 0x191   :  { %203 = vrsqrt.f32 %v133_v44  ;;  %vm141_vm4 = vweird.f32 %v133_v44 }
 0x194   :  { %v130_v45 = vpop.xlane.xlu1 %129 }
 0x195   :  { %v132_v46 = vmul.f32 %v130_v45, %v118_v31 }
 0x197   :  { %v204_v47 = vpop.eup %203  ;;  %v134_v48 = vadd.f32 1e-05, %v132_v46 }
 0x198   :  { %v136_v49 = vmul.f32 %v204_v47, %v133_v44  ;;  %vm142_vm3 = vweird.f32 %v204_v47 }
 0x199   :  { %205 = vrsqrt.f32 %v134_v48  ;;  %vm143_vm5 = vmor %vm141_vm4, %vm142_vm3  ;;  %vm151_vm7 = vweird.f32 %v134_v48 }
 0x19a   :  { %v137_v50 = vmul.f32 %v204_v47, %v136_v49 }
 0x19c   :  { %v138_v51 = vmul.f32 0.5, %v137_v50 }
 0x19e   :  { %v139_v52 = vsub.f32 1.5, %v138_v51 }
 0x19f   :  { %v206_v53 = vpop.eup %205 }
 0x1a0   :  { %v140_v54 = vmul.f32 %v204_v47, %v139_v52  ;;  %v146_v55 = vmul.f32 %v206_v53, %v134_v48  ;;  %vm152_vm6 = vweird.f32 %v206_v53 }
 0x1a1   :  { %vm153_vm8 = vmor %vm151_vm7, %vm152_vm6 }
 0x1a2   :  { %v144_v57 = vsel %vm143_vm5, %v204_v47, %v140_v54  ;;  %v147_v58 = vmul.f32 %v206_v53, %v146_v55 }
 0x1a3   :  { %v155_v60 = vmul.f32 %v144_v57, %v121_v34 }
 0x1a4   :  { %v148_v61 = vmul.f32 0.5, %v147_v58 }
 0x1a5   :  { %v161_v62 = vmul.f32 %v199_v56, %v155_v60 }
 0x1a6   :  { %v149_v63 = vsub.f32 1.5, %v148_v61 }
 0x1a7   :  { %v167_v0 = vadd.f32 %v200_v59, %v161_v62 }
 0x1a8   :  { %v150_v1 = vmul.f32 %v206_v53, %v149_v63 }
 0x1a9   :  { %169 = vst.msk [vmem:[%s299_s6] sm:$0xff] %vm28_vm0, %v167_v0 }
 0x1aa   :  { %v154_v2 = vsel %vm153_vm8, %v206_v53, %v150_v1 }
 0x1ab   :  { %v156_v3 = vmul.f32 %v154_v2, %v122_v39 }
 0x1ad   :  { %v162_v4 = vmul.f32 %v199_v56, %v156_v3 }
 0x1af   :  { %v168_v5 = vadd.f32 %v200_v59, %v162_v4 }
 0x1b1   :  { %170 = vst.msk [vmem:[%s299_s6 + $0x8] sm:$0xff] %vm28_vm0, %v168_v5 }

</bundles_post_ra>
